<compile_context>
chip_gen: v5e
topology: v5e:2x2
jax: 0.10.0
libtpu: 0.0.40
codegen_flags: <defaults>
</compile_context>

<pallas_src>
import functools

import numpy as np
import jax
import jax.numpy as jnp
from jax.experimental import pallas as pl
from jax.experimental.pallas import tpu as pltpu


# ----------------------------- Pallas kernel --------------------------------

def _psp_head_kernel(xa_ref, xb_ref, w3_ref, shift_ref, wf_ref, bf_ref,
                     o_ref, acc_ref):
    # xa:   (1, TH, W+2, Ct)   bf16  padded rows [rt*TH, rt*TH+TH)
    # xb:   (1, 2,  W+2, Ct)   bf16  padded rows [rt*TH+TH, rt*TH+TH+2)  (halo)
    # w3:   (1, 3, 3*Ct, Cm)   bf16  3x3 weights, dx packed along K, BN-folded
    # shift:(1, Cm)            f32   folded BN shift
    # wf:   (Cm, Cout_pad)     bf16  final 1x1 weights (lane-padded)
    # bf:   (1, Cout_pad)      f32   final 1x1 bias (lane-padded)
    # o:    (1, TH, W, Cout_pad) f32
    # acc:  (TH*W, Cm)         f32   VMEM scratch accumulator
    TH = xa_ref.shape[1]
    W = xa_ref.shape[2] - 2
    Ct = xa_ref.shape[3]
    kc = pl.program_id(2)

    @pl.when(kc == 0)
    def _init():
        acc_ref[...] = jnp.zeros_like(acc_ref)

    # (TH+2, W+2, Ct) halo window = TH-row block + 2 extra rows.
    window = jnp.concatenate([xa_ref[0], xb_ref[0]], axis=0)
    # Pack the three dx taps along the lane axis once: K = 3*Ct per matmul.
    cat3 = jnp.concatenate(
        [window[:, 0:W, :], window[:, 1:W + 1, :], window[:, 2:W + 2, :]],
        axis=-1)                                           # (TH+2, W, 3*Ct)

    for dy in range(3):                                    # 3 MXU pushes / Cc tile
        lhs = cat3[dy:dy + TH].reshape(TH * W, 3 * Ct)     # free re-stride (W%8==0)
        acc_ref[...] += jnp.dot(lhs, w3_ref[0, dy],
                                preferred_element_type=jnp.float32)

    @pl.when(kc == pl.num_programs(2) - 1)
    def _finalize():
        # BN scale already folded into w3; add shift, ReLU.
        y = jnp.maximum(acc_ref[...] + shift_ref[...], 0.0)
        # Dropout(p=0.1) is the identity in eval mode.
        out = jnp.dot(y.astype(wf_ref.dtype), wf_ref[...],
                      preferred_element_type=jnp.float32) + bf_ref[...]
        o_ref[...] = out.reshape(1, TH, W, out.shape[-1])


# ------------------------------ tile pickers ---------------------------------

def _pick_row_tile(H, W, Cm):
    """Largest even divisor of H keeping the f32 accumulator around <=4 MiB."""
    limit = max(2, (4 * 1024 * 1024) // max(1, 4 * W * Cm))
    for th in range(H, 1, -1):
        if H % th == 0 and th % 2 == 0 and th <= limit:
            return th
    return H


def _pick_cc_tile(Cc):
    """Cc reduction chunk: multiple of 128 (lane rule), <=512, else full Cc."""
    if Cc % 128 != 0:
        return Cc
    for cand in (512, 384, 256, 128):
        if Cc % cand == 0:
            return cand
    return Cc


# ------------------------------ fused head -----------------------------------

def psp_head_main(x_cat, w3, bn_shift, w_final, b_final,
                  row_tile=None, cc_tile=None):
    """3x3 conv + folded BN + ReLU + (dropout=identity) + 1x1 conv, fused.

    x_cat: (N, H, W, Cc) f32, w3: (3, 3, Cc, Cm) f32 (BN scale folded in),
    bn_shift: (Cm,), w_final: (Cm, Cout), b_final: (Cout,). Returns NHWC f32.
    """
    N, H, W, Cc = x_cat.shape
    Cm = w3.shape[3]
    Cout = w_final.shape[1]
    assert H % 2 == 0, "H must be even"

    TH = row_tile if row_tile is not None else _pick_row_tile(H, W, Cm)
    if H % TH or TH % 2:
        TH = H
    Ct = cc_tile if cc_tile is not None else _pick_cc_tile(Cc)
    if Cc % Ct or (Ct != Cc and Ct % 128):
        Ct = Cc
    R, KT = H // TH, Cc // Ct
    Cout_pad = ((Cout + 127) // 128) * 128

    # Zero-pad the 1-pixel conv halo and cast activations to bf16.
    # TODO(synk): pad/cast is left for XLA to fuse with the upstream concat; a
    # fully in-kernel border (masked taps at rt==0 / rt==R-1) would remove it.
    xp = jnp.pad(x_cat, ((0, 0), (1, 1), (1, 1), (0, 0))).astype(jnp.bfloat16)

    # Re-tile the (BN-folded) 3x3 weights: (3,3,Cc,Cm) -> (KT, 3_dy, 3_dx*Ct, Cm)
    # with the dx taps packed along K to match cat3 in the kernel.
    w3_r = (w3.reshape(3, 3, KT, Ct, Cm)
              .transpose(2, 0, 1, 3, 4)
              .reshape(KT, 3, 3 * Ct, Cm)
              .astype(jnp.bfloat16))

    shift = bn_shift.reshape(1, Cm).astype(jnp.float32)
    wf = jnp.zeros((Cm, Cout_pad), jnp.bfloat16).at[:, :Cout].set(
        w_final.astype(jnp.bfloat16))
    bf = jnp.zeros((1, Cout_pad), jnp.float32).at[0, :Cout].set(
        b_final.reshape(-1).astype(jnp.float32))

    flops = 2 * N * H * W * Cm * (9 * Cc + Cout_pad)
    bytes_accessed = (N * (H + 2 * R) * (W + 2) * Cc * 2   # bf16 activations
                      + N * R * int(w3_r.size) * 2         # weights, refetched per row tile
                      + N * H * W * Cout_pad * 4)          # f32 output

    out = pl.pallas_call(
        _psp_head_kernel,
        out_shape=jax.ShapeDtypeStruct((N, H, W, Cout_pad), jnp.float32),
        grid_spec=pltpu.PrefetchScalarGridSpec(
            num_scalar_prefetch=0,
            grid=(N, R, KT),
            in_specs=[
                # main row block: padded rows [rt*TH, rt*TH+TH)
                pl.BlockSpec((1, TH, W + 2, Ct),
                             lambda n, rt, kc: (n, rt, 0, kc)),
                # 2-row halo block: padded rows [rt*TH+TH, rt*TH+TH+2)
                pl.BlockSpec((1, 2, W + 2, Ct),
                             lambda n, rt, kc: (n, (rt + 1) * (TH // 2), 0, kc)),
                pl.BlockSpec((1, 3, 3 * Ct, Cm),
                             lambda n, rt, kc: (kc, 0, 0, 0)),
                pl.BlockSpec((1, Cm), lambda n, rt, kc: (0, 0)),
                pl.BlockSpec((Cm, Cout_pad), lambda n, rt, kc: (0, 0)),
                pl.BlockSpec((1, Cout_pad), lambda n, rt, kc: (0, 0)),
            ],
            out_specs=pl.BlockSpec((1, TH, W, Cout_pad),
                                   lambda n, rt, kc: (n, rt, 0, 0)),
            scratch_shapes=[pltpu.VMEM((TH * W, Cm), jnp.float32)],
        ),
        compiler_params=pltpu.CompilerParams(
            dimension_semantics=("parallel", "parallel", "arbitrary"),
            vmem_limit_bytes=64 * 1024 * 1024),
        cost_estimate=pl.CostEstimate(flops=flops, transcendentals=0,
                                      bytes_accessed=bytes_accessed),
    )(xp, xp, w3_r, shift, wf, bf)
    return out[..., :Cout]


# ------------------------------ plain-JAX glue -------------------------------

_POOL_SIZES = (1, 2, 3, 6)


def adaptive_avg_pool(x, s):
    """PyTorch AdaptiveAvgPool2d semantics on NHWC: (N,H,W,C) -> (N,s,s,C)."""
    N, H, W, C = x.shape
    rows = []
    for i in range(s):
        h0, h1 = (i * H) // s, -(-((i + 1) * H) // s)
        cols = []
        for j in range(s):
            w0, w1 = (j * W) // s, -(-((j + 1) * W) // s)
            cols.append(jnp.mean(x[:, h0:h1, w0:w1, :], axis=(1, 2)))
        rows.append(jnp.stack(cols, axis=1))
    return jnp.stack(rows, axis=1)


def bilinear_matrix(out_size, in_size):
    """Interp matrix matching F.interpolate(mode='bilinear', align_corners=False)."""
    A = np.zeros((out_size, in_size), np.float32)
    if in_size == 1:
        A[:, 0] = 1.0
        return jnp.asarray(A)
    scale = in_size / out_size
    for i in range(out_size):
        src = max((i + 0.5) * scale - 0.5, 0.0)
        i0 = min(int(np.floor(src)), in_size - 1)
        i1 = min(i0 + 1, in_size - 1)
        l1 = src - i0
        A[i, i0] += 1.0 - l1
        A[i, i1] += l1
    return jnp.asarray(A)


def pyramid_pooling(x, branch_params):
    """PyramidPooling (eval): concat([x] + [up(conv1x1(pool_s(x)))]) on channels.

    The four 1x1+BN+ReLU branches see only 50 pixels per image, so they are left
    to XLA (a Pallas launch per branch is pure dispatch overhead, per review)."""
    N, H, W, Cin = x.shape
    feats = [x]
    for (w, shift), s in zip(branch_params, _POOL_SIZES):
        pooled = adaptive_avg_pool(x, s)                       # (N, s, s, Cin)
        y = jnp.maximum(jnp.einsum('nhwc,cd->nhwd', pooled, w) + shift, 0.0)
        Ah = bilinear_matrix(H, s)
        Aw = bilinear_matrix(W, s)
        feats.append(jnp.einsum('hp,npqc,wq->nhwc', Ah, y, Aw))
    return jnp.concatenate(feats, axis=-1)


def psp_head_forward(x_nchw, params, row_tile=None, cc_tile=None):
    """Matches PSPHead.forward (lightweight=False, eval). x_nchw: (N,Cin,H,W)."""
    x = jnp.transpose(x_nchw, (0, 2, 3, 1)).astype(jnp.float32)     # NHWC
    x_cat = pyramid_pooling(x, params['branch'])
    out = psp_head_main(x_cat, params['w3'], params['bn2_shift'],
                        params['w_final'], params['b_final'],
                        row_tile=row_tile, cc_tile=cc_tile)
    return jnp.transpose(out, (0, 3, 1, 2))                          # NCHW


# ------------------------------ params / reference ---------------------------

def _fold_bn(key, c):
    kg, kb, km, kv = jax.random.split(key, 4)
    gamma = 1.0 + 0.1 * jax.random.normal(kg, (c,), jnp.float32)
    beta = 0.1 * jax.random.normal(kb, (c,), jnp.float32)
    mean = 0.1 * jax.random.normal(km, (c,), jnp.float32)
    var = 0.5 + 0.1 * jnp.abs(jax.random.normal(kv, (c,), jnp.float32))
    scale = gamma / jnp.sqrt(var + 1e-5)
    shift = beta - mean * scale
    return scale, shift


def init_params(key, in_channels, out_channels):
    # lightweight=False -> conv3x3 is a plain Conv2d(Cc, Cm, 3, pad=1, no bias).
    Cin = in_channels
    Cq = Cin // 4                       # pyramid branch output channels
    Cc = Cin + 4 * Cq                   # channels after concatenation
    Cm = Cin // 4                       # inter_channels
    keys = list(jax.random.split(key, 12))
    branch = []
    for b in range(4):
        w = 0.1 * jax.random.normal(keys[2 * b], (Cin, Cq), jnp.float32)
        sc, sh = _fold_bn(keys[2 * b + 1], Cq)
        branch.append((w * sc[None, :], sh))          # BN scale folded into w
    w3 = 0.1 * jax.random.normal(keys[8], (3, 3, Cc, Cm), jnp.float32)
    sc2, sh2 = _fold_bn(keys[9], Cm)
    w3 = w3 * sc2[None, None, None, :]                # BN scale folded into w3
    w_final = 0.1 * jax.random.normal(keys[10], (Cm, out_channels), jnp.float32)
    b_final = 0.1 * jax.random.normal(keys[11], (out_channels,), jnp.float32)
    return dict(branch=branch, w3=w3, bn2_shift=sh2,
                w_final=w_final, b_final=b_final)


def _head_reference(x_cat, w3, bn_shift, w_final, b_final):
    """Plain-JAX head with matching bf16-input / f32-accumulate numerics."""
    N, H, W, Cc = x_cat.shape
    Cm = w3.shape[3]
    xp = jnp.pad(x_cat, ((0, 0), (1, 1), (1, 1), (0, 0)))
    xp = xp.astype(jnp.bfloat16).astype(jnp.float32)
    w3_ = w3.astype(jnp.bfloat16).astype(jnp.float32)
    acc = jnp.zeros((N, H, W, Cm), jnp.float32)
    for dy in range(3):
        for dx in range(3):
            acc = acc + jnp.einsum('nhwc,cm->nhwm',
                                   xp[:, dy:dy + H, dx:dx + W, :], w3_[dy, dx])
    y = jnp.maximum(acc + bn_shift.reshape(1, 1, 1, Cm), 0.0)
    y = y.astype(jnp.bfloat16).astype(jnp.float32)
    wf = w_final.astype(jnp.bfloat16).astype(jnp.float32)
    return jnp.einsum('nhwm,mo->nhwo', y, wf) + b_final.reshape(1, 1, 1, -1)


# ----------------------------------- main ------------------------------------

if __name__ == "__main__":
    key = jax.random.PRNGKey(0)
    kx, kp = jax.random.split(key)
    # Small but tiling-exercising shapes: Cc = 2*Cin = 256 -> 2 reduction tiles
    # of 128 lanes; H=16 with row_tile=8 -> 2 spatial tiles; grid = (2, 2, 2).
    N, Cin, H, W = 2, 128, 16, 16
    Cout = 8
    x = jax.random.normal(kx, (N, Cin, H, W), jnp.float32)
    params = init_params(kp, Cin, Cout)

    fwd = jax.jit(functools.partial(psp_head_forward, row_tile=8, cc_tile=128))
    out = fwd(x, params)
    jax.block_until_ready(out)
    assert out.shape == (N, Cout, H, W), out.shape
    assert bool(jnp.all(jnp.isfinite(out)))

    # Correctness: fused Pallas head vs. plain-JAX reference (same bf16-in /
    # f32-accumulate numerics) on a shared x_cat.
    x_nhwc = jnp.transpose(x, (0, 2, 3, 1))
    x_cat = jax.jit(pyramid_pooling)(x_nhwc, params['branch'])
    head = jax.jit(functools.partial(psp_head_main, row_tile=8, cc_tile=128))
    out_head = head(x_cat, params['w3'], params['bn2_shift'],
                    params['w_final'], params['b_final'])
    ref_head = _head_reference(x_cat, params['w3'], params['bn2_shift'],
                               params['w_final'], params['b_final'])
    err = float(jnp.max(jnp.abs(out_head - ref_head)))
    assert err < 5e-2, f"max abs error vs reference: {err}"

    print("KERNEL_OK")
</pallas_src>

<mosaic_0001>
module attributes {stable_mosaic.version = 11 : i64} {
  func.func @_psp_head_kernel(%arg0: i32, %arg1: i32, %arg2: i32, %arg3: memref<1x8x18x128xbf16, #tpu.memory_space<vmem>>, %arg4: memref<1x2x18x128xbf16, #tpu.memory_space<vmem>>, %arg5: memref<1x3x384x32xbf16, #tpu.memory_space<vmem>>, %arg6: memref<1x32xf32, #tpu.memory_space<vmem>>, %arg7: memref<32x128xbf16, #tpu.memory_space<vmem>>, %arg8: memref<1x128xf32, #tpu.memory_space<vmem>>, %arg9: memref<1x8x16x128xf32, #tpu.memory_space<vmem>>, %arg10: memref<128x32xf32, #tpu.memory_space<vmem>>) attributes {dimension_semantics = [#tpu.dimension_semantics<parallel>, #tpu.dimension_semantics<parallel>, #tpu.dimension_semantics<arbitrary>], iteration_bounds = array<i64: 2, 2, 2>, scalar_prefetch = 0 : i64, scratch_operands = 1 : i64, tpu.core_type = #tpu.core_type<tc>, window_params = [{transform_indices = @transform_0, window_bounds = array<i64: 1, 8, 18, 128>}, {transform_indices = @transform_1, window_bounds = array<i64: 1, 2, 18, 128>}, {transform_indices = @transform_2, window_bounds = array<i64: 1, 3, 384, 32>}, {pipeline_mode = #tpu.pipeline_mode<synchronous>, transform_indices = @transform_3, window_bounds = array<i64: 1, 32>}, {pipeline_mode = #tpu.pipeline_mode<synchronous>, transform_indices = @transform_4, window_bounds = array<i64: 32, 128>}, {pipeline_mode = #tpu.pipeline_mode<synchronous>, transform_indices = @transform_5, window_bounds = array<i64: 1, 128>}, {transform_indices = @transform_6, window_bounds = array<i64: 1, 8, 16, 128>}]} {
    %c0_i32 = arith.constant 0 : i32
    %0 = arith.cmpi eq, %arg2, %c0_i32 : i32
    %1 = arith.extui %0 : i1 to i32
    %c0_i32_0 = arith.constant 0 : i32
    %2 = arith.cmpi ne, %1, %c0_i32_0 : i32
    scf.if %2 {
      %cst_33 = arith.constant 0.000000e+00 : f32
      %39 = vector.broadcast %cst_33 : f32 to vector<128x32xf32>
      %c0_34 = arith.constant 0 : index
      %c0_35 = arith.constant 0 : index
      %40 = vector.load %arg10[%c0_34, %c0_35] : memref<128x32xf32, #tpu.memory_space<vmem>>, vector<128x32xf32>
      tpu.vector_store %arg10[%c0_34, %c0_35], %39 {strides = array<i32>} : memref<128x32xf32, #tpu.memory_space<vmem>>, vector<128x32xf32>,
    } else {
    }
    %c0 = arith.constant 0 : index
    %c0_1 = arith.constant 0 : index
    %c0_2 = arith.constant 0 : index
    %c0_3 = arith.constant 0 : index
    %3 = vector.load %arg3[%c0, %c0_1, %c0_2, %c0_3] : memref<1x8x18x128xbf16, #tpu.memory_space<vmem>>, vector<1x8x18x128xbf16>
    %4 = vector.shape_cast %3 : vector<1x8x18x128xbf16> to vector<8x18x128xbf16>
    %c0_4 = arith.constant 0 : index
    %c0_5 = arith.constant 0 : index
    %c0_6 = arith.constant 0 : index
    %c0_7 = arith.constant 0 : index
    %5 = vector.load %arg4[%c0_4, %c0_5, %c0_6, %c0_7] : memref<1x2x18x128xbf16, #tpu.memory_space<vmem>>, vector<1x2x18x128xbf16>
    %6 = vector.shape_cast %5 : vector<1x2x18x128xbf16> to vector<2x18x128xbf16>
    %7 = tpu.concatenate %4, %6 in 0 : vector<8x18x128xbf16>, vector<2x18x128xbf16> -> vector<10x18x128xbf16>
    %8 = vector.extract_strided_slice %7 {offsets = [0, 0, 0], sizes = [10, 16, 128], strides = [1, 1, 1]} : vector<10x18x128xbf16> to vector<10x16x128xbf16>
    %9 = vector.extract_strided_slice %7 {offsets = [0, 1, 0], sizes = [10, 16, 128], strides = [1, 1, 1]} : vector<10x18x128xbf16> to vector<10x16x128xbf16>
    %10 = vector.extract_strided_slice %7 {offsets = [0, 2, 0], sizes = [10, 16, 128], strides = [1, 1, 1]} : vector<10x18x128xbf16> to vector<10x16x128xbf16>
    %11 = tpu.concatenate %8, %9, %10 in 2 : vector<10x16x128xbf16>, vector<10x16x128xbf16>, vector<10x16x128xbf16> -> vector<10x16x384xbf16>
    %12 = vector.extract_strided_slice %11 {offsets = [0, 0, 0], sizes = [8, 16, 384], strides = [1, 1, 1]} : vector<10x16x384xbf16> to vector<8x16x384xbf16>
    %13 = vector.shape_cast %12 : vector<8x16x384xbf16> to vector<128x384xbf16>
    %c0_8 = arith.constant 0 : index
    %c0_9 = arith.constant 0 : index
    %14 = vector.load %arg10[%c0_8, %c0_9] : memref<128x32xf32, #tpu.memory_space<vmem>>, vector<128x32xf32>
    %c0_10 = arith.constant 0 : index
    %c0_11 = arith.constant 0 : index
    %c0_12 = arith.constant 0 : index
    %c0_13 = arith.constant 0 : index
    %15 = vector.load %arg5[%c0_10, %c0_11, %c0_12, %c0_13] : memref<1x3x384x32xbf16, #tpu.memory_space<vmem>>, vector<1x1x384x32xbf16>
    %16 = vector.shape_cast %15 : vector<1x1x384x32xbf16> to vector<384x32xbf16>
    %cst = arith.constant dense<0.000000e+00> : vector<128x32xf32>
    %17 = tpu.matmul %13, %16, %cst {dimension_numbers = #tpu.dot_dimension_numbers<[1], [0], [0], [1], [0, 0, 1, 1], [], []>} : vector<128x384xbf16>, vector<384x32xbf16>, vector<128x32xf32> -> vector<128x32xf32>
    %18 = arith.addf %14, %17 : vector<128x32xf32>
    %c0_14 = arith.constant 0 : index
    %c0_15 = arith.constant 0 : index
    %19 = vector.load %arg10[%c0_14, %c0_15] : memref<128x32xf32, #tpu.memory_space<vmem>>, vector<128x32xf32>
    tpu.vector_store %arg10[%c0_14, %c0_15], %18 {strides = array<i32>} : memref<128x32xf32, #tpu.memory_space<vmem>>, vector<128x32xf32>,
    %20 = vector.extract_strided_slice %11 {offsets = [1, 0, 0], sizes = [8, 16, 384], strides = [1, 1, 1]} : vector<10x16x384xbf16> to vector<8x16x384xbf16>
    %21 = vector.shape_cast %20 : vector<8x16x384xbf16> to vector<128x384xbf16>
    %c0_16 = arith.constant 0 : index
    %c0_17 = arith.constant 0 : index
    %22 = vector.load %arg10[%c0_16, %c0_17] : memref<128x32xf32, #tpu.memory_space<vmem>>, vector<128x32xf32>
    %c0_18 = arith.constant 0 : index
    %c1 = arith.constant 1 : index
    %c0_19 = arith.constant 0 : index
    %c0_20 = arith.constant 0 : index
    %23 = vector.load %arg5[%c0_18, %c1, %c0_19, %c0_20] : memref<1x3x384x32xbf16, #tpu.memory_space<vmem>>, vector<1x1x384x32xbf16>
    %24 = vector.shape_cast %23 : vector<1x1x384x32xbf16> to vector<384x32xbf16>
    %cst_21 = arith.constant dense<0.000000e+00> : vector<128x32xf32>
    %25 = tpu.matmul %21, %24, %cst_21 {dimension_numbers = #tpu.dot_dimension_numbers<[1], [0], [0], [1], [0, 0, 1, 1], [], []>} : vector<128x384xbf16>, vector<384x32xbf16>, vector<128x32xf32> -> vector<128x32xf32>
    %26 = arith.addf %22, %25 : vector<128x32xf32>
    %c0_22 = arith.constant 0 : index
    %c0_23 = arith.constant 0 : index
    %27 = vector.load %arg10[%c0_22, %c0_23] : memref<128x32xf32, #tpu.memory_space<vmem>>, vector<128x32xf32>
    tpu.vector_store %arg10[%c0_22, %c0_23], %26 {strides = array<i32>} : memref<128x32xf32, #tpu.memory_space<vmem>>, vector<128x32xf32>,
    %28 = vector.extract_strided_slice %11 {offsets = [2, 0, 0], sizes = [8, 16, 384], strides = [1, 1, 1]} : vector<10x16x384xbf16> to vector<8x16x384xbf16>
    %29 = vector.shape_cast %28 : vector<8x16x384xbf16> to vector<128x384xbf16>
    %c0_24 = arith.constant 0 : index
    %c0_25 = arith.constant 0 : index
    %30 = vector.load %arg10[%c0_24, %c0_25] : memref<128x32xf32, #tpu.memory_space<vmem>>, vector<128x32xf32>
    %c0_26 = arith.constant 0 : index
    %c2 = arith.constant 2 : index
    %c0_27 = arith.constant 0 : index
    %c0_28 = arith.constant 0 : index
    %31 = vector.load %arg5[%c0_26, %c2, %c0_27, %c0_28] : memref<1x3x384x32xbf16, #tpu.memory_space<vmem>>, vector<1x1x384x32xbf16>
    %32 = vector.shape_cast %31 : vector<1x1x384x32xbf16> to vector<384x32xbf16>
    %cst_29 = arith.constant dense<0.000000e+00> : vector<128x32xf32>
    %33 = tpu.matmul %29, %32, %cst_29 {dimension_numbers = #tpu.dot_dimension_numbers<[1], [0], [0], [1], [0, 0, 1, 1], [], []>} : vector<128x384xbf16>, vector<384x32xbf16>, vector<128x32xf32> -> vector<128x32xf32>
    %34 = arith.addf %30, %33 : vector<128x32xf32>
    %c0_30 = arith.constant 0 : index
    %c0_31 = arith.constant 0 : index
    %35 = vector.load %arg10[%c0_30, %c0_31] : memref<128x32xf32, #tpu.memory_space<vmem>>, vector<128x32xf32>
    tpu.vector_store %arg10[%c0_30, %c0_31], %34 {strides = array<i32>} : memref<128x32xf32, #tpu.memory_space<vmem>>, vector<128x32xf32>,
    %c1_i32 = arith.constant 1 : i32
    %36 = arith.cmpi eq, %arg2, %c1_i32 : i32
    %37 = arith.extui %36 : i1 to i32
    %c0_i32_32 = arith.constant 0 : i32
    %38 = arith.cmpi ne, %37, %c0_i32_32 : i32
    scf.if %38 {
      %c0_33 = arith.constant 0 : index
      %c0_34 = arith.constant 0 : index
      %39 = vector.load %arg10[%c0_33, %c0_34] : memref<128x32xf32, #tpu.memory_space<vmem>>, vector<128x32xf32>
      %c0_35 = arith.constant 0 : index
      %c0_36 = arith.constant 0 : index
      %40 = vector.load %arg6[%c0_35, %c0_36] : memref<1x32xf32, #tpu.memory_space<vmem>>, vector<1x32xf32>
      %41 = vector.broadcast %40 : vector<1x32xf32> to vector<128x32xf32>
      %42 = arith.addf %39, %41 : vector<128x32xf32>
      %cst_37 = arith.constant 0.000000e+00 : f32
      %43 = vector.broadcast %cst_37 : f32 to vector<128x32xf32>
      %44 = arith.maximumf %42, %43 : vector<128x32xf32>
      %45 = arith.truncf %44 : vector<128x32xf32> to vector<128x32xbf16>
      %c0_38 = arith.constant 0 : index
      %c0_39 = arith.constant 0 : index
      %46 = vector.load %arg7[%c0_38, %c0_39] : memref<32x128xbf16, #tpu.memory_space<vmem>>, vector<32x128xbf16>
      %cst_40 = arith.constant dense<0.000000e+00> : vector<128x128xf32>
      %47 = tpu.matmul %45, %46, %cst_40 {dimension_numbers = #tpu.dot_dimension_numbers<[1], [0], [0], [1], [0, 0, 1, 1], [], []>} : vector<128x32xbf16>, vector<32x128xbf16>, vector<128x128xf32> -> vector<128x128xf32>
      %c0_41 = arith.constant 0 : index
      %c0_42 = arith.constant 0 : index
      %48 = vector.load %arg8[%c0_41, %c0_42] : memref<1x128xf32, #tpu.memory_space<vmem>>, vector<1x128xf32>
      %49 = vector.broadcast %48 : vector<1x128xf32> to vector<128x128xf32>
      %50 = arith.addf %47, %49 : vector<128x128xf32>
      %51 = vector.shape_cast %50 : vector<128x128xf32> to vector<1x8x16x128xf32>
      %c0_43 = arith.constant 0 : index
      %c0_44 = arith.constant 0 : index
      %c0_45 = arith.constant 0 : index
      %c0_46 = arith.constant 0 : index
      %52 = vector.load %arg9[%c0_43, %c0_44, %c0_45, %c0_46] : memref<1x8x16x128xf32, #tpu.memory_space<vmem>>, vector<1x8x16x128xf32>
      tpu.vector_store %arg9[%c0_43, %c0_44, %c0_45, %c0_46], %51 {strides = array<i32>} : memref<1x8x16x128xf32, #tpu.memory_space<vmem>>, vector<1x8x16x128xf32>,
    } else {
    }
    return
  }
  func.func @transform_0(%arg0: i32, %arg1: i32, %arg2: i32) -> (i32, i32, i32, i32) {
    %c0_i32 = arith.constant 0 : i32
    %c0_i32_0 = arith.constant 0 : i32
    return %arg0, %arg1, %c0_i32, %arg2 : i32, i32, i32, i32
  }
  func.func @transform_1(%arg0: i32, %arg1: i32, %arg2: i32) -> (i32, i32, i32, i32) {
    %c1_i32 = arith.constant 1 : i32
    %0 = arith.addi %arg1, %c1_i32 : i32
    %c4_i32 = arith.constant 4 : i32
    %1 = arith.muli %0, %c4_i32 : i32
    %c0_i32 = arith.constant 0 : i32
    %c0_i32_0 = arith.constant 0 : i32
    return %arg0, %1, %c0_i32, %arg2 : i32, i32, i32, i32
  }
  func.func @transform_2(%arg0: i32, %arg1: i32, %arg2: i32) -> (i32, i32, i32, i32) {
    %c0_i32 = arith.constant 0 : i32
    %c0_i32_0 = arith.constant 0 : i32
    %c0_i32_1 = arith.constant 0 : i32
    %c0_i32_2 = arith.constant 0 : i32
    return %arg2, %c0_i32, %c0_i32_0, %c0_i32_1 : i32, i32, i32, i32
  }
  func.func @transform_3(%arg0: i32, %arg1: i32, %arg2: i32) -> (i32, i32) {
    %c0_i32 = arith.constant 0 : i32
    %c0_i32_0 = arith.constant 0 : i32
    %c0_i32_1 = arith.constant 0 : i32
    return %c0_i32, %c0_i32_0 : i32, i32
  }
  func.func @transform_4(%arg0: i32, %arg1: i32, %arg2: i32) -> (i32, i32) {
    %c0_i32 = arith.constant 0 : i32
    %c0_i32_0 = arith.constant 0 : i32
    %c0_i32_1 = arith.constant 0 : i32
    return %c0_i32, %c0_i32_0 : i32, i32
  }
  func.func @transform_5(%arg0: i32, %arg1: i32, %arg2: i32) -> (i32, i32) {
    %c0_i32 = arith.constant 0 : i32
    %c0_i32_0 = arith.constant 0 : i32
    %c0_i32_1 = arith.constant 0 : i32
    return %c0_i32, %c0_i32_0 : i32, i32
  }
  func.func @transform_6(%arg0: i32, %arg1: i32, %arg2: i32) -> (i32, i32, i32, i32) {
    %c0_i32 = arith.constant 0 : i32
    %c0_i32_0 = arith.constant 0 : i32
    %c0_i32_1 = arith.constant 0 : i32
    return %arg0, %arg1, %c0_i32, %c0_i32_0 : i32, i32, i32, i32
  }
}

</mosaic_0001>

<bundles_post_ra>
// kernel: psp_head_forward.1
= control target key start
LH: loop header
LB: loop body
LE: loop exit
PB: predicated region body
PF: predicated region fallthrough
CT: control target
= control target key end

     0   :  { %s4143_s0 = inlined_call_operand.vmem [shape: bf16[2,18,18,256], index: 0, kind: input, shape index: {}, may-alias: {0,1}]   ;;  %s4144_s1 = inlined_call_operand.vmem [shape: bf16[2,18,18,256], index: 1, kind: input, shape index: {}, may-alias: {0,1}]   ;;  %s4145_s2 = inlined_call_operand.vmem [shape: bf16[2,3,384,32], index: 2, kind: input, shape index: {}]   ;;  %s4146_s3 = inlined_call_operand.vmem [shape: f32[1,32], index: 3, kind: input, shape index: {}]   ;;  %s4147_s4 = inlined_call_operand.vmem [shape: bf16[32,128], index: 4, kind: input, shape index: {}]   ;;  %s4148_s5 = inlined_call_operand.vmem [shape: f32[1,128], index: 5, kind: input, shape index: {}]   ;;  %s4149_s6 = inlined_call_operand.vmem [shape: f32[2,16,16,128], index: 6, kind: output, shape index: {}]  }
   0x1   :  { %4153 = sst [smem:[#allocation7_spill]] %s4143_s0 }
   0x2   :  { %4154 = sst [smem:[#allocation8_spill]] %s4145_s2 }
   0x3   :  { %4155 = sst [smem:[#allocation9_spill]] %s4146_s3 }
   0x4   :  { %4156 = sst [smem:[#allocation10_spill]] %s4147_s4 }
   0x5   :  { %4157 = sst [smem:[#allocation11_spill]] %s4148_s5 }
   0x6   :  { %4158 = sst [smem:[#allocation12_spill]] %s4149_s6 }
   0x7   :  { %s3417_s21 = smov 0   ;;  %s3419_s22 = smov 0  }
   0x8   :  { %s3421_s23 = smov 0   ;;  %s3423_s24 = smov 0  }
   0x9   :  { %s3425_s25 = smov 0   ;;  %s3427_s26 = smov 0  }
   0xa   :  { %s3429_s27 = smov 0   ;;  %s3431_s28 = smov 0  }
   0xb   :  { %s3433_s29 = smov 0   ;;  %s3435_s30 = smov 0  }
   0xc   :  { %s3437_s7 = smov 0  }
   0xd LB: > { %s28_s8 = sadd.s32 1, %s3334_s28  ;;  %s31_s9 = sadd.s32 1, %s3338_s29  ;;  %s3346_s7 = sphi %s3437_s7, %s16_s7   ;;  %s3342_s30 = sphi %s3435_s30, %s4185_s30   ;;  %s3338_s29 = sphi %s3433_s29, %s4184_s29   ;;  %s3334_s28 = sphi %s3431_s28, %s4183_s28   ;;  %s3330_s27 = sphi %s3429_s27, %s4182_s27   ;;  %s3326_s26 = sphi %s3427_s26, %s4181_s26   ;;  %s3322_s25 = sphi %s3425_s25, %s4180_s25   ;;  %s3318_s24 = sphi %s3423_s24, %s4179_s24   ;;  %s3314_s23 = sphi %s3421_s23, %s4178_s23   ;;  %s3310_s22 = sphi %s3419_s22, %s4177_s22   ;;  %s3306_s21 = sphi %s3417_s21, %s4176_s21  }
   0xe   : > { %p29_p0 = scmp.ge.s32.totalorder %s28_s8, 2  ;;  %p53_p1 = scmp.ne.s32.totalorder %s3318_s24, %s3314_s23 }
   0xf   : > { %s35_s10 = sadd.s32 1, %s3342_s30  ;;  %p54_p2 = scmp.eq.s32.totalorder %s3346_s7, 0 }
  0x10   : > { %s4187_s8 = smov (%p29_p0, %s28_s8), 0  ;;  %s4189_s9 = smov (!%p29_p0, %s31_s9), %s3338_s29 }
  0x11   : > { %p33_p3 = scmp.ge.s32.totalorder %s4189_s9, 2  ;;  %s2941_s11 = sshll.u32 %s3338_s29, 2 }
  0x12   : > { %p3484_p4 = por %p54_p2, %p53_p1  ;;  %s2942_s13 = sadd.s32 4, %s2941_s11 }
  0x13   : > { %s4191_s9 = smov (%p33_p3, %s4189_s9), 0  ;;  %s4193_s10 = smov (!%p33_p3, %s35_s10), %s3342_s30 }
  0x14   : > { %4160 = sst [smem:[#allocation5_spill]] %s4191_s9  ;;  %s46_s14 = sadd.s32 1, %s3318_s24 }
  0x15   : > { %s2943_s15 = sshll.u32 %s4191_s9, 2  ;;  %p37_p5 = scmp.ge.s32.totalorder %s4193_s10, 2 }
  0x16   : > { %s2944_s16 = sadd.s32 4, %s2943_s15  ;;  %s40_s17 = ssub.s32 %s3338_s29, %s4191_s9 }
  0x17   : > { %s74_s18 = ssub.s32 %s2942_s13, %s2944_s16  ;;  %s4195_s10 = smov (%p37_p5, %s4193_s10), 0 }
  0x18   : > { %4161 = sst [smem:[#allocation6_spill]] %s4195_s10  ;;  %s42_s19 = ssub.s32 %s3334_s28, %s4187_s8 }
  0x19   : > { %s80_s20 = sadd.s32 1, %s3310_s22  ;;  %s39_s11 = ssub.s32 %s3342_s30, %s4195_s10 }
  0x1a   : > { %p87_p6 = scmp.ne.s32.totalorder %s3310_s22, %s3306_s21  ;;  %s41_s5 = sor.u32 %s40_s17, %s39_s11 }
  0x1b   : > { %s75_s3 = sor.u32 %s74_s18, %s39_s11  ;;  %s43_s4 = sor.u32 %s42_s19, %s41_s5 }
  0x1c   : > { %s77_s6 = sor.u32 %s75_s3, %s42_s19  ;;  %p44_p7 = scmp.eq.s32.totalorder %s43_s4, 0 }
  0x1d   : > { %p78_p8 = scmp.eq.s32.totalorder %s77_s6, 0  ;;  %p3506_p9 = por %p87_p6, %p54_p2 }
  0x1e   : > { %s3511_s15 = scalar_select %p44_p7, %s3318_s24, %s46_s14  }
  0x1f   : > { %s3514_s13 = scalar_select %p78_p8, %s3310_s22, %s80_s20  }
  0x20   : > { %p2470_p10 = scmp.ge.s32.totalorder %s3346_s7, 8 }
  0x22   : > { %239 = sbr.rel (%p2470_p10) target bundleno = 126 (0x7e), region = 28 }
  0x27   : > { %242 = sbr.rel (!%p3484_p4) target bundleno = 111 (0x6f), region = 32  ;;  %s244_s3 = sand.u32 (%p3484_p4), 1, %s3318_s24  }
  0x28   : > { %s3059_s4 = smul.u32 (%p3484_p4), 96, %s244_s3  ;;  %s4163_s0 = sld [smem:[#allocation7_spill]] (%p3484_p4) }
  0x29   : > { %s3060_s5 = smul.u32 (%p3484_p4), 48, %s3338_s29  ;;  %s3380_s12 = smov (%p3484_p4), 24  }
  0x2a   : > { %s3061_s6 = smul.u32 (%p3484_p4), 108, %s3342_s30  ;;  %s3528_s11 = scalar_lea.vmem (%p3484_p4), [#allocation3], %s3059_s4  }
  0x2b   : > { %s255_s16 = sadd.s32 (%p3484_p4), %s3334_s28, %s3060_s5  ;;  %3220 = sdivrem.u32 (%p3484_p4), %s3380_s12, 24 }
  0x2c   : > { %s257_s17 = sadd.s32 %s3061_s6, %s255_s16 }
  0x2d   : > { %s2476_s14 = sshll.u32 %s257_s17, 2 }
  0x2e   : > { %s3526_s20 = scalar_lea.vmem %s4163_s0, %s2476_s14  }
  0x34   : > { %s3531_s10 = spop.drf %3220 }
  0x35   : > { %s3222_s9 = spop.drf %3220  ;;  %p2478_p11 = scmp.le.s32.totalorder %s3531_s10, 0 }
  0x36   : > { %s4164_s3 = smov (!%p2478_p11), %s3528_s11  ;;  %s4165_s5 = smov (!%p2478_p11), %s3526_s20 }
  0x37   : > { %2392 = sbr.rel (%p2478_p11) target bundleno = 85 (0x55), region = 191  ;;  %s3540_s6 = smov (!%p2478_p11), 0  }
  0x38   : > { %s3542_s16 = smov (!%p2478_p11), 0  }
  0x3c LB: >> { %v281_v0 = vld [vmem:[%s3354_s5] sm:$0xf]  ;;  %v283_v1 = vld [vmem:[%s3354_s5 + $0x8] sm:$0xf]  ;;  %v285_v2 = vld [vmem:[%s3354_s5 + $0x10] sm:$0xf]  ;;  %s3362_s16 = sphi %s3542_s16, %s275_s16   ;;  %s3358_s6 = sphi %s3540_s6, %s4168_s6   ;;  %s3354_s5 = sphi %s4165_s5, %s4167_s5   ;;  %s3350_s3 = sphi %s4164_s3, %s4166_s3  }
  0x3d   : >> { %282 = vst [vmem:[%s3350_s3] sm:$0xf] %v281_v0  ;;  %v287_v3 = vld [vmem:[%s3354_s5 + $0x18] sm:$0xf]  ;;  %v289_v4 = vld [vmem:[%s3354_s5 + $0x20] sm:$0xf]  ;;  %s329_s9 = sadd.s32 1, %s3358_s6 }
  0x3e   : >> { %284 = vst [vmem:[%s3350_s3 + $0x4] sm:$0xf] %v283_v1  ;;  %v291_v5 = vld [vmem:[%s3354_s5 + $0x28] sm:$0xf]  ;;  %v293_v6 = vld [vmem:[%s3354_s5 + $0x30] sm:$0xf]  ;;  %p330_p12 = scmp.ge.s32.totalorder %s329_s9, %s3531_s10 }
  0x3f   : >> { %286 = vst [vmem:[%s3350_s3 + $0x8] sm:$0xf] %v285_v2  ;;  %v295_v7 = vld [vmem:[%s3354_s5 + $0x38] sm:$0xf]  ;;  %v297_v8 = vld [vmem:[%s3354_s5 + $0x40] sm:$0xf] }
  0x40   : >> { %288 = vst [vmem:[%s3350_s3 + $0xc] sm:$0xf] %v287_v3  ;;  %v299_v9 = vld [vmem:[%s3354_s5 + $0x48] sm:$0xf]  ;;  %v301_v10 = vld [vmem:[%s3354_s5 + $0x50] sm:$0xf] }
  0x41   : >> { %290 = vst [vmem:[%s3350_s3 + $0x10] sm:$0xf] %v289_v4  ;;  %v303_v11 = vld [vmem:[%s3354_s5 + $0x58] sm:$0xf]  ;;  %v305_v12 = vld [vmem:[%s3354_s5 + $0x60] sm:$0xf] }
  0x42   : >> { %292 = vst [vmem:[%s3350_s3 + $0x14] sm:$0xf] %v291_v5  ;;  %v307_v13 = vld [vmem:[%s3354_s5 + $0x68] sm:$0xf]  ;;  %s4197_s9 = smov (%p330_p12, %s329_s9), 0  ;;  %s275_s16 = sadd.s32 1, %s3362_s16  }
  0x43   : >> { %294 = vst [vmem:[%s3350_s3 + $0x18] sm:$0xf] %v293_v6  ;;  %v309_v14 = vld [vmem:[%s3354_s5 + $0x70] sm:$0xf]  ;;  %v311_v15 = vld [vmem:[%s3354_s5 + $0x78] sm:$0xf]  ;;  %p274_p13 = scmp.ge.s32.totalorder %s275_s16, %s3531_s10  ;;  %s4168_s6 = smov %s4197_s9 }
  0x44   : >> { %296 = vst [vmem:[%s3350_s3 + $0x1c] sm:$0xf] %v295_v7  ;;  %s332_s4 = smul.u32 192, %s4197_s9  ;;  %v313_v16 = vld [vmem:[%s3354_s5 + $0x80] sm:$0xf] }
  0x45   : >> { %298 = vst [vmem:[%s3350_s3 + $0x20] sm:$0xf] %v297_v8  ;;  %s333_s17 = smul.u32 96, %s4197_s9  ;;  %v315_v17 = vld [vmem:[%s3354_s5 + $0x88] sm:$0xf] }
  0x46   : >> { %300 = vst [vmem:[%s3350_s3 + $0x24] sm:$0xf] %v299_v9  ;;  %s334_s14 = scalar_lea.vmem %s3526_s20, %s332_s4   ;;  %v317_v18 = vld [vmem:[%s3354_s5 + $0x90] sm:$0xf]  ;;  %v319_v19 = vld [vmem:[%s3354_s5 + $0x98] sm:$0xf] }
  0x47   : >> { %302 = vst [vmem:[%s3350_s3 + $0x28] sm:$0xf] %v301_v10  ;;  %s335_s18 = scalar_lea.vmem %s3528_s11, %s333_s17 [#allocation3]   ;;  %v321_v20 = vld [vmem:[%s3354_s5 + $0xa0] sm:$0xf]  ;;  %v323_v21 = vld [vmem:[%s3354_s5 + $0xa8] sm:$0xf] }
  0x48   : >> { %304 = vst [vmem:[%s3350_s3 + $0x2c] sm:$0xf] %v303_v11  ;;  %v325_v22 = vld [vmem:[%s3354_s5 + $0xb0] sm:$0xf]  ;;  %v327_v23 = vld [vmem:[%s3354_s5 + $0xb8] sm:$0xf]  ;;  %s4167_s5 = smov %s334_s14 }
  0x49   : >> { %306 = vst [vmem:[%s3350_s3 + $0x30] sm:$0xf] %v305_v12 }
  0x4a   : >> { %308 = vst [vmem:[%s3350_s3 + $0x34] sm:$0xf] %v307_v13 }
  0x4b   : >> { %310 = vst [vmem:[%s3350_s3 + $0x38] sm:$0xf] %v309_v14 }
  0x4c   : >> { %312 = vst [vmem:[%s3350_s3 + $0x3c] sm:$0xf] %v311_v15 }
  0x4d   : >> { %314 = vst [vmem:[%s3350_s3 + $0x40] sm:$0xf] %v313_v16 }
  0x4e   : >> { %316 = vst [vmem:[%s3350_s3 + $0x44] sm:$0xf] %v315_v17 }
  0x4f   : >> { %318 = vst [vmem:[%s3350_s3 + $0x48] sm:$0xf] %v317_v18 }
  0x50   : >> { %320 = vst [vmem:[%s3350_s3 + $0x4c] sm:$0xf] %v319_v19  ;;  %277 = sbr.rel (!%p274_p13) target bundleno = 60 (0x3c), region = 197 }
  0x51   : >> { %322 = vst [vmem:[%s3350_s3 + $0x50] sm:$0xf] %v321_v20 }
  0x52   : >> { %324 = vst [vmem:[%s3350_s3 + $0x54] sm:$0xf] %v323_v21 }
  0x53   : >> { %326 = vst [vmem:[%s3350_s3 + $0x58] sm:$0xf] %v325_v22 }
  0x54   : >> { %328 = vst [vmem:[%s3350_s3 + $0x5c] sm:$0xf] %v327_v23  ;;  %s4166_s3 = smov %s335_s18 }
  0x55 PF: > { %3223 = sdivrem.u32 %s3380_s12, 24 }
  0x56   : > { %s2479_s19 = smul.u32 192, %s3531_s10 }
  0x57   : > { %s2480_s4 = smul.u32 96, %s3531_s10 }
  0x58   : > { %s3627_s17 = scalar_lea.vmem %s3526_s20, %s2479_s19  }
  0x59   : > { %s3630_s0 = scalar_lea.vmem %s3528_s11, %s2480_s4 [#allocation3]  }
  0x5e   : > { %s3224_s18 = spop.drf %3223 }
  0x5f   : > { %s3225_s14 = spop.drf %3223 }
  0x60   : > { %p2481_p0 = scmp.le.s32.totalorder %s3225_s14, 0 }
  0x61   : > { %s3364_s16 = smov (!%p2481_p0), %s3630_s0   ;;  %s3368_s3 = smov (!%p2481_p0), %s3627_s17  }
  0x62   : > { %2406 = sbr.rel (%p2481_p0) target bundleno = 111 (0x6f), region = 202  ;;  %s3372_s5 = smov (!%p2481_p0), 0  }
  0x63   : > { %s3376_s6 = smov (!%p2481_p0), 0  }
  0x67 LB: >> { %v352_v24 = vld [vmem:[%s3370_s3] sm:$0xf]  ;;  %s354_s10 = sadd.s32 1, %s3374_s5  ;;  %s346_s6 = sadd.s32 1, %s3378_s6   ;;  %s3378_s6 = sphi %s3376_s6, %s346_s6   ;;  %s3374_s5 = sphi %s3372_s5, %s3373_s5   ;;  %s3370_s3 = sphi %s3368_s3, %s359_s3   ;;  %s3366_s16 = sphi %s3364_s16, %s360_s16  }
  0x68   : >> { %353 = vst [vmem:[%s3366_s16] sm:$0xf] %v352_v24  ;;  %p355_p1 = scmp.ge.s32.totalorder %s354_s10, %s3225_s14  ;;  %p345_p2 = scmp.ge.s32.totalorder %s346_s6, %s3225_s14 }
  0x6a   : >> { %s4199_s10 = smov (%p355_p1, %s354_s10), 0  ;;  %348 = sbr.rel (!%p345_p2) target bundleno = 103 (0x67), region = 208 }
  0x6b   : >> { %s2482_s20 = sshll.u32 %s4199_s10, 3  ;;  %s2483_s11 = sshll.u32 %s4199_s10, 2 }
  0x6c   : >> { %s359_s3 = scalar_lea.vmem %s3627_s17, %s2482_s20   ;;  %s360_s16 = scalar_lea.vmem %s3630_s0, %s2483_s11 [#allocation3]  }
  0x6d   : >> { %s3373_s5 = smov %s4199_s10  }
  0x6f PF: > { %459 = sbr.rel (!%p3506_p9) target bundleno = 126 (0x7e), region = 80  ;;  %s461_s12 = sand.u32 (%p3506_p9), 1, %s3310_s22  }
  0x70   : > { %s2342_s9 = smul.u32 (%p3506_p9), 48, %s3338_s29 }
  0x71   : > { %s3062_s19 = smul.u32 (%p3506_p9), 24, %s461_s12 }
  0x72   : > { %s2343_s4 = sadd.s32 (%p3506_p9), %s3334_s28, %s2342_s9  ;;  %s2344_s18 = smul.u32 (%p3506_p9), 108, %s3342_s30 }
  0x73   : > { %s463_s0 = scalar_lea.vmem (%p3506_p9), [#allocation4], %s3062_s19 }
  0x74   : > { %s2345_s5 = sadd.s32 %s2344_s18, %s2343_s4 }
  0x75   : > { %s2484_s16 = sshll.u32 %s2345_s5, 2 }
  0x76   : > { %s2347_s6 = scalar_lea.vmem %s4144_s1, %s2484_s16 }
  0x77   : > { %v2485_v25 = vld [vmem:[%s2347_s6 + $0xc0] sm:$0xf]  ;;  %v2486_v26 = vld [vmem:[%s2347_s6 + $0xc8] sm:$0xf]  ;;  %v2487_v27 = vld [vmem:[%s2347_s6 + $0xd0] sm:$0xf] }
  0x78   : > { %490 = vst [vmem:[%s463_s0] sm:$0xf] %v2485_v25  ;;  %v2488_v28 = vld [vmem:[%s2347_s6 + $0xd8] sm:$0xf]  ;;  %v2489_v29 = vld [vmem:[%s2347_s6 + $0xe0] sm:$0xf] }
  0x79   : > { %492 = vst [vmem:[%s463_s0 + $0x4] sm:$0xf] %v2486_v26  ;;  %v2490_v30 = vld [vmem:[%s2347_s6 + $0xe8] sm:$0xf] }
  0x7a   : > { %494 = vst [vmem:[%s463_s0 + $0x8] sm:$0xf] %v2487_v27 }
  0x7b   : > { %496 = vst [vmem:[%s463_s0 + $0xc] sm:$0xf] %v2488_v28 }
  0x7c   : > { %498 = vst [vmem:[%s463_s0 + $0x10] sm:$0xf] %v2489_v29 }
  0x7d   : > { %500 = vst [vmem:[%s463_s0 + $0x14] sm:$0xf] %v2490_v30 }
  0x7e PF: > { %p2491_p3 = scmp.ge.s32.totalorder %s3346_s7, 1  ;;  %p543_p4 = scmp.lt.s32.totalorder %s3346_s7, 9 }
  0x80   : > { %p544_p5 = pnand %p2491_p3, %p543_p4 }
  0x81   : > { %s550_s2 = sand.u32 (!%p544_p5), 1, %s3314_s23   ;;  %s557_s17 = sand.u32 (!%p544_p5), 1, %s3306_s21  }
  0x82   : > { %547 = sbr.rel (%p544_p5) target bundleno = 788 (0x314), region = 125  ;;  %p609_p6 = scmp.lt.s32.totalorder (!%p544_p5), %s3322_s25, 1 }
  0x83   : > { %s3063_s14 = smul.u32 (!%p544_p5), 96, %s550_s2  ;;  %s2493_s11 = sshll.u32 (!%p544_p5), %s3326_s26, 3 }
  0x84   : > { %s3064_s20 = smul.u32 (!%p544_p5), 24, %s557_s17  ;;  %p615_p7 = scmp.lt.s32.totalorder (!%p544_p5), %s3330_s27, 1 }
  0x85   : > { %p617_p8 = scmp.lt.s32.totalorder (!%p544_p5), %s2493_s11, 15  ;;  %s4169_s18 = sld [smem:[#allocation8_spill]] (!%p544_p5) }
  0x86   : > { %s4170_s0 = sld [smem:[#allocation12_spill]] (!%p544_p5)  ;;  %s3664_s26 = scalar_lea.vmem (!%p544_p5), [#allocation3], %s3063_s14 }
  0x87   : > { %s610_s12 = scalar_select %p609_p6, %s3322_s25, 1 }
  0x88   : > { %s4201_s27 = smov (!%p615_p7, %s3330_s27), 1  ;;  %s4203_s11 = smov (!%p617_p8, %s2493_s11), 15 }
  0x89   : > { %s3065_s9 = smul.u32 576, %s610_s12  ;;  %s2495_s16 = sshll.u32 %s4201_s27, 5 }
  0x8a   : > { %s2494_s3 = sshll.u32 %s4203_s11, 1  ;;  %s3666_s17 = scalar_lea.vmem [#allocation4], %s3064_s20 }
  0x8b   : > { %s3657_s5 = scalar_lea.vmem %s4169_s18, %s3065_s9  ;;  %s621_s10 = sadd.s32 %s2495_s16, %s2494_s3 }
  0x8c   : > { %s2496_s23 = sshll.u32 %s621_s10, 3  ;;  %p2497_p9 = scmp.ne.s32.totalorder %s3322_s25, 0 }
  0x8d   : > { %s3662_s2 = scalar_lea.vmem %s4170_s0, %s2496_s23 }
  0x8e   : > { %629 = sbr.rel (%p2497_p9) target bundleno = 164 (0xa4), region = 137 }
  0x93   : > { %vm630_vm0 = vcmask 261120   ;;  %v3381_v31 = vmov 0.0  }
  0x94   : > { %631 = vst.msk [vmem:[#allocation2] sm:$0xff] %vm630_vm0, %v3381_v31 }
  0x95   : > { %632 = vst.msk [vmem:[#allocation2 + $0x8] sm:$0xff] %vm630_vm0, %v3381_v31 }
  0x96   : > { %633 = vst.msk [vmem:[#allocation2 + $0x10] sm:$0xff] %vm630_vm0, %v3381_v31 }
  0x97   : > { %634 = vst.msk [vmem:[#allocation2 + $0x18] sm:$0xff] %vm630_vm0, %v3381_v31 }
  0x98   : > { %635 = vst.msk [vmem:[#allocation2 + $0x20] sm:$0xff] %vm630_vm0, %v3381_v31 }
  0x99   : > { %636 = vst.msk [vmem:[#allocation2 + $0x28] sm:$0xff] %vm630_vm0, %v3381_v31 }
  0x9a   : > { %637 = vst.msk [vmem:[#allocation2 + $0x30] sm:$0xff] %vm630_vm0, %v3381_v31 }
  0x9b   : > { %638 = vst.msk [vmem:[#allocation2 + $0x38] sm:$0xff] %vm630_vm0, %v3381_v31 }
  0x9c   : > { %639 = vst.msk [vmem:[#allocation2 + $0x40] sm:$0xff] %vm630_vm0, %v3381_v31 }
  0x9d   : > { %640 = vst.msk [vmem:[#allocation2 + $0x48] sm:$0xff] %vm630_vm0, %v3381_v31 }
  0x9e   : > { %641 = vst.msk [vmem:[#allocation2 + $0x50] sm:$0xff] %vm630_vm0, %v3381_v31 }
  0x9f   : > { %642 = vst.msk [vmem:[#allocation2 + $0x58] sm:$0xff] %vm630_vm0, %v3381_v31 }
  0xa0   : > { %643 = vst.msk [vmem:[#allocation2 + $0x60] sm:$0xff] %vm630_vm0, %v3381_v31 }
  0xa1   : > { %644 = vst.msk [vmem:[#allocation2 + $0x68] sm:$0xff] %vm630_vm0, %v3381_v31 }
  0xa2   : > { %645 = vst.msk [vmem:[#allocation2 + $0x70] sm:$0xff] %vm630_vm0, %v3381_v31 }
  0xa3   : > { %646 = vst.msk [vmem:[#allocation2 + $0x78] sm:$0xff] %vm630_vm0, %v3381_v31 }
  0xa4 PF: > { %v2962_v32 = vld [vmem:[%s3657_s5 + $0x38] sm:$0xff]  ;;  %v2961_v33 = vld [vmem:[%s3657_s5 + $0x30] sm:$0xff]  ;;  %v2960_v34 = vld [vmem:[%s3657_s5 + $0x28] sm:$0xff]  ;;  %vm767_vm1 = vsmask.f32 7424  ;;  %vm898_vm2 = vcmask 1046528  }
  0xa5   : > { %3029 = vmatpush.bf16.msra.mxu1 %v2962_v32  ;;  %3030 = vmatpush.bf16.msra.mxu2 %v2962_v32  ;;  %v2959_v35 = vld [vmem:[%s3657_s5 + $0x20] sm:$0xff]  ;;  %v2958_v36 = vld [vmem:[%s3657_s5 + $0x18] sm:$0xff]  ;;  %v2957_v37 = vld [vmem:[%s3657_s5 + $0x10] sm:$0xff]  ;;  %vm1310_vm3 = vcmask 261120   ;;  %p2922_p10 = scmp.ne.s32.totalorder %s3322_s25, 1 }
  0xa6   : > { %3031 = vmatpush.bf16.msra.mxu3 %v2962_v32  ;;  %1147 = vmatpush.bf16.msra.mxu0 %v2962_v32  ;;  %v2956_v38 = vld [vmem:[%s3657_s5 + $0x8] sm:$0xff]  ;;  %v2955_v39 = vld [vmem:[%s3657_s5] sm:$0xff]  ;;  %v2970_v40 = vld [vmem:[%s3657_s5 + $0x78] sm:$0xff]  ;;  %s4171_s20 = sld [smem:[#allocation10_spill]] (!%p2922_p10) }
  0xa7   : > { %v2978_v41 = vld [vmem:[%s3657_s5 + $0xb8] sm:$0xff]  ;;  %v3699_v43 = vld [vmem:[%s3664_s26 + $0x30] sm:$0xff]  ;;  %v3702_v44 = vld [vmem:[%s3664_s26 + $0x48] sm:$0xff]  ;;  %s4172_s4 = sld [smem:[#allocation9_spill]] (!%p2922_p10) }
  0xa8   : > { %v3696_v42 = vld [vmem:[%s3664_s26 + $0x18] sm:$0xff]  ;;  %v3705_v45 = vld [vmem:[%s3664_s26] sm:$0xff]  ;;  %v2969_v48 = vld [vmem:[%s3657_s5 + $0x70] sm:$0xff] }
  0xa9   : > { %3032 = vmatpush.bf16.msra.mxu1 %v2961_v33  ;;  %3033 = vmatpush.bf16.msra.mxu2 %v2961_v33  ;;  %v2986_v46 = vld [vmem:[%s3657_s5 + $0xf8] sm:$0xff]  ;;  %v2977_v49 = vld [vmem:[%s3657_s5 + $0xb0] sm:$0xff]  ;;  %v2968_v52 = vld [vmem:[%s3657_s5 + $0x68] sm:$0xff]  ;;  %v771_v11 = vshll.u32 %v3705_v45, 16  ;;  %v769_v18 = vshrl.u32 %v3705_v45, 16  ;;  %v899_v32 = vrot.slane %v3705_v45, 1 }
  0xaa   : > { %3034 = vmatpush.bf16.msra.mxu3 %v2961_v33  ;;  %1148 = vmatpush.bf16.msra.mxu0 %v2961_v33  ;;  %v2994_v47 = vld [vmem:[%s3657_s5 + $0x138] sm:$0xff]  ;;  %v2985_v50 = vld [vmem:[%s3657_s5 + $0xf0] sm:$0xff]  ;;  %v2976_v53 = vld [vmem:[%s3657_s5 + $0xa8] sm:$0xff] }
  0xab   : > { %v2993_v51 = vld [vmem:[%s3657_s5 + $0x130] sm:$0xff]  ;;  %v2984_v54 = vld [vmem:[%s3657_s5 + $0xe8] sm:$0xff]  ;;  %v2967_v56 = vld [vmem:[%s3657_s5 + $0x60] sm:$0xff]  ;;  %v773_v19 = vrot.slane %v771_v11, 1 }
  0xac   : > { %v2992_v55 = vld [vmem:[%s3657_s5 + $0x128] sm:$0xff]  ;;  %v2975_v57 = vld [vmem:[%s3657_s5 + $0xa0] sm:$0xff]  ;;  %v2966_v61 = vld [vmem:[%s3657_s5 + $0x58] sm:$0xff] }
  0xad   : > { %3035 = vmatpush.bf16.msra.mxu1 %v2960_v34  ;;  %3036 = vmatpush.bf16.msra.mxu2 %v2960_v34  ;;  %v2983_v58 = vld [vmem:[%s3657_s5 + $0xe0] sm:$0xff]  ;;  %v649_v60 = vld [vmem:[%s3664_s26 + $0x8] sm:$0x1]  ;;  %v2974_v62 = vld [vmem:[%s3657_s5 + $0x98] sm:$0xff]  ;;  %v774_v30 = vor.u32 %v773_v19, %v769_v18 }
  0xae   : > { %3037 = vmatpush.bf16.msra.mxu3 %v2960_v34  ;;  %1149 = vmatpush.bf16.msra.mxu0 %v2960_v34  ;;  %v2991_v59 = vld [vmem:[%s3657_s5 + $0x120] sm:$0xff]  ;;  %v652_v63 = vld [vmem:[%s3664_s26 + $0x14] sm:$0x1]  ;;  %v3739_v3 = vld [vmem:[%s3664_s26 + $0xc] sm:$0xff]  ;;  %v747_v4 = vunpack.c.l.b16 %v649_v60 }
  0xaf   : > { %v3730_v0 = vld [vmem:[%s3664_s26 + $0x24] sm:$0xff]  ;;  %v3733_v1 = vld [vmem:[%s3664_s26 + $0x3c] sm:$0xff]  ;;  %v3736_v2 = vld [vmem:[%s3664_s26 + $0x54] sm:$0xff]  ;;  %v748_v7 = vunpack.c.l.b16 %v652_v63  ;;  %v783_v15 = vshll.u32 %v3739_v3, 16  ;;  %v781_v23 = vshrl.u32 %v3739_v3, 16 }
  0xb0   : > { %v2982_v5 = vld [vmem:[%s3657_s5 + $0xd8] sm:$0xff]  ;;  %v2965_v8 = vld [vmem:[%s3657_s5 + $0x50] sm:$0xff]  ;;  %v757_v10 = vpack.c.b16 %v747_v4, %v747_v4  ;;  %v2964_v16 = vld [vmem:[%s3657_s5 + $0x48] sm:$0xff] }
  0xb1   : > { %3038 = vmatpush.bf16.msra.mxu1 %v2959_v35  ;;  %3039 = vmatpush.bf16.msra.mxu2 %v2959_v35  ;;  %v2990_v6 = vld [vmem:[%s3657_s5 + $0x118] sm:$0xff]  ;;  %v2973_v9 = vld [vmem:[%s3657_s5 + $0x90] sm:$0xff]  ;;  %v3752_v14 = vpack.c.b16 %v748_v7, %v748_v7  ;;  %v2972_v17 = vld [vmem:[%s3657_s5 + $0x88] sm:$0xff]  ;;  %v785_v24 = vrot.slane %v783_v15, 1 }
  0xb2   : > { %3040 = vmatpush.bf16.msra.mxu3 %v2959_v35  ;;  %1150 = vmatpush.bf16.msra.mxu0 %v2959_v35  ;;  %v2981_v12 = vld [vmem:[%s3657_s5 + $0xd0] sm:$0xff]  ;;  %v776_v20 = vshll.u32 %v757_v10, 16  ;;  %v2980_v21 = vld [vmem:[%s3657_s5 + $0xc8] sm:$0xff]  ;;  %v2963_v26 = vld [vmem:[%s3657_s5 + $0x40] sm:$0xff]  ;;  %v900_v33 = vrot.slane %v757_v10, 1 }
  0xb3   : > { %v2989_v13 = vld [vmem:[%s3657_s5 + $0x110] sm:$0xff]  ;;  %v2988_v22 = vld [vmem:[%s3657_s5 + $0x108] sm:$0xff]  ;;  %v788_v25 = vshll.u32 %v3752_v14, 16  ;;  %v2971_v27 = vld [vmem:[%s3657_s5 + $0x80] sm:$0xff] }
  0xb4   : > { %v3002_v28 = vld [vmem:[%s3657_s5 + $0x178] sm:$0xff]  ;;  %v778_v31 = vrot.slane %v776_v20, 1  ;;  %v2979_v34 = vld [vmem:[%s3657_s5 + $0xc0] sm:$0xff] }
  0xb5   : > { %3041 = vmatpush.bf16.msra.mxu1 %v2958_v36  ;;  %3042 = vmatpush.bf16.msra.mxu2 %v2958_v36  ;;  %v3010_v29 = vld [vmem:[%s3657_s5 + $0x1b8] sm:$0xff]  ;;  %v2987_v35 = vld [vmem:[%s3657_s5 + $0x100] sm:$0xff] }
  0xb6   : > { %3043 = vmatpush.bf16.msra.mxu3 %v2958_v36  ;;  %1151 = vmatpush.bf16.msra.mxu0 %v2958_v36  ;;  %v786_v36 = vor.u32 %v785_v24, %v781_v23  ;;  %v3015_v10 = vld [vmem:[%s3657_s5 + $0x1e0] sm:$0xff] }
  0xb9   : > { %3044 = vmatpush.bf16.msra.mxu1 %v2957_v37  ;;  %3045 = vmatpush.bf16.msra.mxu2 %v2957_v37 }
  0xba   : > { %3046 = vmatpush.bf16.msra.mxu3 %v2957_v37  ;;  %1152 = vmatpush.bf16.msra.mxu0 %v2957_v37  ;;  %v790_v37 = vrot.slane %v788_v25, 1  ;;  %v2998_v25 = vld [vmem:[%s3657_s5 + $0x158] sm:$0xff] }
  0xbd   : > { %3047 = vmatpush.bf16.msra.mxu1 %v2956_v38  ;;  %3048 = vmatpush.bf16.msra.mxu2 %v2956_v38 }
  0xbe   : > { %3049 = vmatpush.bf16.msra.mxu3 %v2956_v38  ;;  %1153 = vmatpush.bf16.msra.mxu0 %v2956_v38  ;;  %v3018_v38 = vld [vmem:[%s3657_s5 + $0x1f8] sm:$0xff] }
  0xc1   : > { %3050 = vmatpush.bf16.msra.mxu1 %v2955_v39  ;;  %3051 = vmatpush.bf16.msra.mxu2 %v2955_v39 }
  0xc2   : > { %3052 = vmatpush.bf16.msra.mxu3 %v2955_v39  ;;  %1154 = vmatpush.bf16.msra.mxu0 %v2955_v39  ;;  %v3026_v39 = vld [vmem:[%s3657_s5 + $0x238] sm:$0xff] }
  0xc4   : > { %1165 = vmatmul.bf16.vlgmr.msra.gmra.mxu1 %v3696_v42  ;;  %1175 = vmatmul.bf16.vlgmr.msra.gmra.mxu2 %v3699_v43 }
  0xc5   : > { %1196 = vmatpush.bf16.msrb.mxu1 %v2970_v40  ;;  %1245 = vmatpush.bf16.msrb.mxu2 %v2978_v41  ;;  %v655_v40 = vld [vmem:[%s3664_s26 + $0x20] sm:$0x1]  ;;  %v779_v41 = vsel %vm767_vm1, %v774_v30, %v778_v31  ;;  %v3022_v30 = vld [vmem:[%s3657_s5 + $0x218] sm:$0xff]  ;;  %v817_v31 = vshrl.u32 %v3699_v43, 16 }
  0xc6   : > { %1185 = vmatmul.bf16.vlgmr.msra.gmra.mxu3 %v3702_v44  ;;  %1155 = vmatmul.bf16.vlgmr.msra.gmra.mxu0 %v3705_v45  ;;  %v901_v45 = vsel %vm898_vm2, %v899_v32, %v900_v33 }
  0xc7   : > { %1536 = vmatpush.bf16.msrb.mxu3 %v2986_v46  ;;  %1585 = vmatpush.bf16.msrb.mxu0 %v2994_v47  ;;  %v791_v46 = vsel %vm767_vm1, %v786_v36, %v790_v37  ;;  %v3001_v47 = vld [vmem:[%s3657_s5 + $0x170] sm:$0xff] }
  0xc9   : > { %1197 = vmatpush.bf16.msrb.mxu1 %v2969_v48  ;;  %1246 = vmatpush.bf16.msrb.mxu2 %v2977_v49  ;;  %v749_v48 = vunpack.c.l.b16 %v655_v40  ;;  %v3009_v49 = vld [vmem:[%s3657_s5 + $0x1b0] sm:$0xff] }
  0xcb   : > { %1537 = vmatpush.bf16.msrb.mxu3 %v2985_v50  ;;  %1586 = vmatpush.bf16.msrb.mxu0 %v2993_v51  ;;  %v3017_v50 = vld [vmem:[%s3657_s5 + $0x1f0] sm:$0xff] }
  0xcc   : > { %v3025_v51 = vld [vmem:[%s3657_s5 + $0x230] sm:$0xff] }
  0xcd   : > { %1198 = vmatpush.bf16.msrb.mxu1 %v2968_v52  ;;  %1247 = vmatpush.bf16.msrb.mxu2 %v2976_v53  ;;  %v759_v52 = vpack.c.b16 %v749_v48, %v749_v48  ;;  %v795_v53 = vshll.u32 %v3696_v42, 16 }
  0xcf   : > { %1538 = vmatpush.bf16.msrb.mxu3 %v2984_v54  ;;  %1587 = vmatpush.bf16.msrb.mxu0 %v2992_v55  ;;  %v3000_v54 = vld [vmem:[%s3657_s5 + $0x168] sm:$0xff]  ;;  %v800_v60 = vshll.u32 %v759_v52, 16  ;;  %v906_v18 = vrot.slane %v759_v52, 1 }
  0xd0   : > { %v3008_v55 = vld [vmem:[%s3657_s5 + $0x1a8] sm:$0xff] }
  0xd1   : > { %1199 = vmatpush.bf16.msrb.mxu1 %v2967_v56  ;;  %1248 = vmatpush.bf16.msrb.mxu2 %v2975_v57  ;;  %v3016_v56 = vld [vmem:[%s3657_s5 + $0x1e8] sm:$0xff]  ;;  %v802_v4 = vrot.slane %v800_v60, 1 }
  0xd2   : > { %v3024_v57 = vld [vmem:[%s3657_s5 + $0x228] sm:$0xff] }
  0xd3   : > { %1539 = vmatpush.bf16.msrb.mxu3 %v2983_v58  ;;  %1588 = vmatpush.bf16.msrb.mxu0 %v2991_v59  ;;  %v793_v58 = vshrl.u32 %v3696_v42, 16  ;;  %v797_v59 = vrot.slane %v795_v53, 1 }
  0xd4   : > { %1170 = vmatmul.bf16.gmra.mxu1 %v3730_v0  ;;  %1180 = vmatmul.bf16.gmra.mxu2 %v3733_v1 }
  0xd5   : > { %1200 = vmatpush.bf16.msrb.mxu1 %v2966_v61  ;;  %1249 = vmatpush.bf16.msrb.mxu2 %v2974_v62  ;;  %v902_v61 = vrot.slane %v3739_v3, 1  ;;  %v903_v62 = vrot.slane %v3752_v14, 1  ;;  %v798_v63 = vor.u32 %v797_v59, %v793_v58  ;;  %v805_v14 = vshrl.u32 %v3730_v0, 16  ;;  %v667_v58 = vld [vmem:[%s3664_s26 + $0x50] sm:$0x1] }
  0xd6   : > { %1190 = vmatmul.bf16.gmra.mxu3 %v3736_v2  ;;  %1160 = vmatmul.bf16.gmra.mxu0 %v3739_v3 }
  0xd7   : > { %1540 = vmatpush.bf16.msrb.mxu3 %v2982_v5  ;;  %1589 = vmatpush.bf16.msrb.mxu0 %v2990_v6  ;;  %v658_v5 = vld [vmem:[%s3664_s26 + $0x2c] sm:$0x1]  ;;  %v3790_v6 = vsel %vm898_vm2, %v902_v61, %v903_v62  ;;  %v3793_v7 = vsel %vm767_vm1, %v798_v63, %v802_v4  ;;  %v753_v61 = vunpack.c.l.b16 %v667_v58 }
  0xd8   : > { %v2996_v62 = vld [vmem:[%s3657_s5 + $0x148] sm:$0xff] }
  0xd9   : > { %1201 = vmatpush.bf16.msrb.mxu1 %v2965_v8  ;;  %1250 = vmatpush.bf16.msrb.mxu2 %v2973_v9  ;;  %v750_v8 = vunpack.c.l.b16 %v658_v5  ;;  %v3007_v9 = vld [vmem:[%s3657_s5 + $0x1a0] sm:$0xff]  ;;  %v3004_v63 = vld [vmem:[%s3657_s5 + $0x188] sm:$0xff]  ;;  %v763_v5 = vpack.c.b16 %v753_v61, %v753_v61 }
  0xda   : > { %v3012_v4 = vld [vmem:[%s3657_s5 + $0x1c8] sm:$0xff] }
  0xdb   : > { %1541 = vmatpush.bf16.msrb.mxu3 %v2981_v12  ;;  %1590 = vmatpush.bf16.msrb.mxu0 %v2989_v13  ;;  %v760_v11 = vpack.c.b16 %v750_v8, %v750_v8  ;;  %v807_v12 = vshll.u32 %v3730_v0, 16  ;;  %v3023_v13 = vld [vmem:[%s3657_s5 + $0x220] sm:$0xff]  ;;  %v843_v8 = vshll.u32 %v3702_v44, 16 }
  0xdd   : > { %1202 = vmatpush.bf16.msrb.mxu1 %v2964_v16  ;;  %1251 = vmatpush.bf16.msrb.mxu2 %v2972_v17  ;;  %v809_v15 = vrot.slane %v807_v12, 1  ;;  %v812_v16 = vshll.u32 %v760_v11, 16  ;;  %v905_v17 = vrot.slane %v3696_v42, 1  ;;  %v914_v12 = vrot.slane %v3733_v1, 1 }
  0xdf   : > { %1542 = vmatpush.bf16.msrb.mxu3 %v2980_v21  ;;  %1591 = vmatpush.bf16.msrb.mxu0 %v2988_v22  ;;  %v810_v19 = vor.u32 %v809_v15, %v805_v14  ;;  %v814_v20 = vrot.slane %v812_v16, 1  ;;  %v661_v21 = vld [vmem:[%s3664_s26 + $0x38] sm:$0x1]  ;;  %v3807_v22 = vsel %vm898_vm2, %v905_v17, %v906_v18  ;;  %v670_v16 = vld [vmem:[%s3664_s26 + $0x5c] sm:$0x1] }
  0xe0   : > { %v751_v24 = vunpack.c.l.b16 %v661_v21  ;;  %v3003_v21 = vld [vmem:[%s3657_s5 + $0x180] sm:$0xff] }
  0xe1   : > { %1203 = vmatpush.bf16.msrb.mxu1 %v2963_v26  ;;  %1252 = vmatpush.bf16.msrb.mxu2 %v2971_v27  ;;  %v3810_v23 = vsel %vm767_vm1, %v810_v19, %v814_v20  ;;  %v3006_v26 = vld [vmem:[%s3657_s5 + $0x198] sm:$0xff]  ;;  %v754_v19 = vunpack.c.l.b16 %v670_v16  ;;  %v2995_v20 = vld [vmem:[%s3657_s5 + $0x140] sm:$0xff] }
  0xe2   : > { %v3014_v27 = vld [vmem:[%s3657_s5 + $0x1d8] sm:$0xff] }
  0xe3   : > { %1543 = vmatpush.bf16.msrb.mxu3 %v2979_v34  ;;  %1592 = vmatpush.bf16.msrb.mxu0 %v2987_v35  ;;  %v908_v34 = vrot.slane %v3730_v0, 1  ;;  %v909_v35 = vrot.slane %v760_v11, 1  ;;  %v3020_v11 = vld [vmem:[%s3657_s5 + $0x208] sm:$0xff] }
  0xe4   : > { %1204 = vmatmul.bf16.vlgmr.msrb.gmra.mxu1 %v779_v41  ;;  %1253 = vmatmul.bf16.vlgmr.msrb.gmra.mxu2 %v901_v45  ;;  %v2997_v45 = vld [vmem:[%s3657_s5 + $0x150] sm:$0xff] }
  0xe5   : > { %1634 = vmatpush.bf16.msra.mxu1 %v3002_v28  ;;  %1924 = vmatpush.bf16.msra.mxu2 %v3010_v29  ;;  %v761_v28 = vpack.c.b16 %v751_v24, %v751_v24  ;;  %v819_v29 = vshll.u32 %v3699_v43, 16  ;;  %v3011_v24 = vld [vmem:[%s3657_s5 + $0x1c0] sm:$0xff] }
  0xe6   : > { %1544 = vmatmul.bf16.vlgmr.msrb.gmra.mxu3 %v3739_v3  ;;  %1593 = vmatmul.bf16.vlgmr.msrb.gmra.mxu0 %v791_v46  ;;  %v2999_v3 = vld [vmem:[%s3657_s5 + $0x160] sm:$0xff] }
  0xe7   : > { %1973 = vmatpush.bf16.msra.mxu3 %v3018_v38  ;;  %2022 = vmatpush.bf16.msra.mxu0 %v3026_v39  ;;  %v821_v32 = vrot.slane %v819_v29, 1  ;;  %v824_v33 = vshll.u32 %v761_v28, 16  ;;  %v664_v38 = vld [vmem:[%s3664_s26 + $0x44] sm:$0x1]  ;;  %v3825_v39 = vsel %vm898_vm2, %v908_v34, %v909_v35  ;;  %v673_v35 = vld [vmem:[%s3666_s17 + $0x8] sm:$0x1] }
  0xe8   : > { %v752_v41 = vunpack.c.l.b16 %v664_v38 }
  0xe9   : > { %1635 = vmatpush.bf16.msra.mxu1 %v3001_v47  ;;  %1925 = vmatpush.bf16.msra.mxu2 %v3009_v49  ;;  %v822_v36 = vor.u32 %v821_v32, %v817_v31  ;;  %v826_v37 = vrot.slane %v824_v33, 1  ;;  %v3013_v47 = vld [vmem:[%s3657_s5 + $0x1d0] sm:$0xff]  ;;  %v831_v49 = vshll.u32 %v3733_v1, 16  ;;  %v917_v31 = vrot.slane %v3702_v44, 1 }
  0xea   : > { %v762_v48 = vpack.c.b16 %v752_v41, %v752_v41  ;;  %v918_v32 = vrot.slane %v763_v5, 1 }
  0xeb   : > { %1974 = vmatpush.bf16.msra.mxu3 %v3017_v50  ;;  %2023 = vmatpush.bf16.msra.mxu0 %v3025_v51  ;;  %v3828_v40 = vsel %vm767_vm1, %v822_v36, %v826_v37  ;;  %v3021_v50 = vld [vmem:[%s3657_s5 + $0x210] sm:$0xff]  ;;  %v829_v51 = vshrl.u32 %v3733_v1, 16  ;;  %v833_v52 = vrot.slane %v831_v49, 1 }
  0xec   : > { %v836_v53 = vshll.u32 %v762_v48, 16  ;;  %v3881_v37 = vsel %vm898_vm2, %v917_v31, %v918_v32 }
  0xed   : > { %1636 = vmatpush.bf16.msra.mxu1 %v3000_v54  ;;  %1926 = vmatpush.bf16.msra.mxu2 %v3008_v55  ;;  %v911_v54 = vrot.slane %v3699_v43, 1  ;;  %v912_v55 = vrot.slane %v761_v28, 1 }
  0xef   : > { %1975 = vmatpush.bf16.msra.mxu3 %v3016_v56  ;;  %2024 = vmatpush.bf16.msra.mxu0 %v3024_v57  ;;  %v834_v56 = vor.u32 %v833_v52, %v829_v51  ;;  %v838_v57 = vrot.slane %v836_v53, 1  ;;  %v3843_v59 = vsel %vm898_vm2, %v911_v54, %v912_v55 }
  0xf1   : > { %1637 = vmatpush.bf16.msra.mxu1 %v2999_v3  ;;  %1927 = vmatpush.bf16.msra.mxu2 %v3007_v9  ;;  %v3846_v60 = vsel %vm767_vm1, %v834_v56, %v838_v57  ;;  %v841_v3 = vshrl.u32 %v3702_v44, 16  ;;  %v845_v9 = vrot.slane %v843_v8, 1  ;;  %v920_v56 = vrot.slane %v3736_v2, 1 }
  0xf3   : > { %1976 = vmatpush.bf16.msra.mxu3 %v3015_v10  ;;  %2025 = vmatpush.bf16.msra.mxu0 %v3023_v13  ;;  %v848_v10 = vshll.u32 %v763_v5, 16  ;;  %v915_v13 = vrot.slane %v762_v48, 1  ;;  %v846_v14 = vor.u32 %v845_v9, %v841_v3 }
  0xf4   : > { %1209 = vmatmul.bf16.gmra.mxu1 %v791_v46  ;;  %1258 = vmatmul.bf16.gmra.mxu2 %v3790_v6  ;;  %v3005_v46 = vld [vmem:[%s3657_s5 + $0x190] sm:$0xff] }
  0xf5   : > { %1638 = vmatpush.bf16.msra.mxu1 %v2998_v25  ;;  %1928 = vmatpush.bf16.msra.mxu2 %v3006_v26  ;;  %v850_v15 = vrot.slane %v848_v10, 1  ;;  %v3861_v17 = vsel %vm898_vm2, %v914_v12, %v915_v13  ;;  %v764_v25 = vpack.c.b16 %v754_v19, %v754_v19  ;;  %v855_v26 = vshll.u32 %v3736_v2, 16 }
  0xf6   : > { %1549 = vmatmul.bf16.gmra.mxu3 %v3696_v42  ;;  %1598 = vmatmul.bf16.gmra.mxu0 %v3793_v7 }
  0xf7   : > { %1977 = vmatpush.bf16.msra.mxu3 %v3014_v27  ;;  %2026 = vmatpush.bf16.msra.mxu0 %v3022_v30  ;;  %v3864_v18 = vsel %vm767_vm1, %v846_v14, %v850_v15  ;;  %v853_v27 = vshrl.u32 %v3736_v2, 16  ;;  %v857_v28 = vrot.slane %v855_v26, 1  ;;  %v860_v29 = vshll.u32 %v764_v25, 16  ;;  %v3019_v30 = vld [vmem:[%s3657_s5 + $0x200] sm:$0xff]  ;;  %s4173_s5 = sld [smem:[#allocation11_spill]] (!%p2922_p10) }
  0xf8   : > { %v921_v57 = vrot.slane %v764_v25, 1 }
  0xf9   : > { %1639 = vmatpush.bf16.msra.mxu1 %v2997_v45  ;;  %1929 = vmatpush.bf16.msra.mxu2 %v3005_v46  ;;  %v858_v33 = vor.u32 %v857_v28, %v853_v27  ;;  %v862_v34 = vrot.slane %v860_v29, 1  ;;  %v3887_v45 = vld [vmem:[%s3666_s17] sm:$0xff]  ;;  %v755_v46 = vunpack.c.l.b16 %v673_v35 }
  0xfa   : > { %v867_v48 = vshll.u32 %v3887_v45, 16  ;;  %v865_v53 = vshrl.u32 %v3887_v45, 16  ;;  %v3912_v5 = vsel %vm898_vm2, %v920_v56, %v921_v57 }
  0xfb   : > { %1978 = vmatpush.bf16.msra.mxu3 %v3013_v47  ;;  %2027 = vmatpush.bf16.msra.mxu0 %v3021_v50  ;;  %v3884_v41 = vsel %vm767_vm1, %v858_v33, %v862_v34  ;;  %v3893_v47 = vpack.c.b16 %v755_v46, %v755_v46  ;;  %v941_v46 = vld [vmem:[#allocation2 + $0x10] sm:$0xff] }
  0xfc   : > { %v869_v54 = vrot.slane %v867_v48, 1 }
  0xfd   : > { %1640 = vmatpush.bf16.msra.mxu1 %v2996_v62  ;;  %1930 = vmatpush.bf16.msra.mxu2 %v3004_v63  ;;  %v872_v55 = vshll.u32 %v3893_v47, 16 }
  0xfe   : > { %v870_v58 = vor.u32 %v869_v54, %v865_v53 }
  0xff   : > { %1979 = vmatpush.bf16.msra.mxu3 %v3012_v4  ;;  %2028 = vmatpush.bf16.msra.mxu0 %v3020_v11  ;;  %v874_v61 = vrot.slane %v872_v55, 1 }
 0x101   : > { %1641 = vmatpush.bf16.msra.mxu1 %v2995_v20  ;;  %1931 = vmatpush.bf16.msra.mxu2 %v3003_v21  ;;  %v3915_v3 = vsel %vm767_vm1, %v870_v58, %v874_v61  ;;  %v939_v20 = vld [vmem:[#allocation2] sm:$0xff] }
 0x103   : > { %1980 = vmatpush.bf16.msra.mxu3 %v3011_v24  ;;  %2029 = vmatpush.bf16.msra.mxu0 %v3019_v30  ;;  %v940_v30 = vld [vmem:[#allocation2 + $0x8] sm:$0xff] }
 0x104   : > { %1214 = vmatmul.bf16.gmra.mxu1 %v3793_v7  ;;  %1263 = vmatmul.bf16.gmra.mxu2 %v3807_v22 }
 0x106   : > { %1554 = vmatmul.bf16.gmra.mxu3 %v3730_v0  ;;  %1603 = vmatmul.bf16.gmra.mxu0 %v3810_v23 }
 0x114   : > { %1219 = vmatmul.bf16.gmra.mxu1 %v3810_v23  ;;  %1268 = vmatmul.bf16.gmra.mxu2 %v3825_v39 }
 0x116   : > { %1559 = vmatmul.bf16.gmra.mxu3 %v3699_v43  ;;  %1608 = vmatmul.bf16.gmra.mxu0 %v3828_v40 }
 0x124   : > { %1224 = vmatmul.bf16.gmra.mxu1 %v3828_v40  ;;  %1273 = vmatmul.bf16.gmra.mxu2 %v3843_v59 }
 0x126   : > { %1564 = vmatmul.bf16.gmra.mxu3 %v3733_v1  ;;  %1613 = vmatmul.bf16.gmra.mxu0 %v3846_v60 }
 0x134   : > { %1229 = vmatmul.bf16.gmra.mxu1 %v3846_v60  ;;  %1278 = vmatmul.bf16.gmra.mxu2 %v3861_v17 }
 0x136   : > { %1569 = vmatmul.bf16.gmra.mxu3 %v3702_v44  ;;  %1618 = vmatmul.bf16.gmra.mxu0 %v3864_v18 }
 0x141   : > { %v3878_v36 = vpop.f32.mrf.mxu1 }
 0x143   : > { %v1156_v38 = vpop.f32.mrf.mxu0 }
 0x144   : > { %1234 = vmatmul.bf16.gmra.mxu1 %v3864_v18  ;;  %1283 = vmatmul.bf16.gmra.mxu2 %v3881_v37 }
 0x146   : > { %1574 = vmatmul.bf16.gmra.mxu3 %v3736_v2  ;;  %1623 = vmatmul.bf16.gmra.mxu0 %v3884_v41 }
 0x147   : > { %v3896_v49 = vpop.f32.mrf.mxu2 }
 0x149   : > { %v3898_v50 = vpop.f32.mrf.mxu3  ;;  %v3900_v51 = vpop.f32.mrf.mxu1 }
 0x14b   : > { %v1158_v52 = vpop.f32.mrf.mxu0 }
 0x14f   : > { %v3905_v62 = vpop.f32.mrf.mxu2 }
 0x151   : > { %v3907_v63 = vpop.f32.mrf.mxu3  ;;  %v3909_v4 = vpop.f32.mrf.mxu1 }
 0x153   : > { %v1161_v8 = vpop.f32.mrf.mxu0 }
 0x154   : > { %1239 = vmatmul.bf16.gmra.mxu1 %v3884_v41  ;;  %1288 = vmatmul.bf16.gmra.mxu2 %v3912_v5 }
 0x156   : > { %1579 = vmatmul.bf16.gmra.mxu3 %v3887_v45  ;;  %1628 = vmatmul.bf16.gmra.mxu0 %v3915_v3 }
 0x157   : > { %v3921_v9 = vpop.f32.mrf.mxu2 }
 0x159   : > { %v3923_v10 = vpop.f32.mrf.mxu3  ;;  %v3925_v11 = vpop.f32.mrf.mxu1 }
 0x15b   : > { %v1163_v12 = vpop.f32.mrf.mxu0 }
 0x15f   : > { %v3927_v13 = vpop.f32.mrf.mxu2 }
 0x161   : > { %v3929_v14 = vpop.f32.mrf.mxu3  ;;  %v1205_v15 = vpop.f32.mrf.mxu1 }
 0x162   : > { %v1206_v19 = vadd.f32 %v1205_v15, %v1156_v38 }
 0x163   : > { %v1594_v16 = vpop.f32.mrf.mxu0 }
 0x164   : > { %1642 = vmatmul.bf16.vlgmr.msra.gmra.mxu1 %v3790_v6  ;;  %1932 = vmatmul.bf16.vlgmr.msra.gmra.mxu2 %v3696_v42 }
 0x166   : > { %1981 = vmatmul.bf16.vlgmr.msra.gmra.mxu3 %v3793_v7  ;;  %2030 = vmatmul.bf16.vlgmr.msra.gmra.mxu0 %v3807_v22 }
 0x167   : > { %v1254_v21 = vpop.f32.mrf.mxu2 }
 0x168   : > { %v1255_v24 = vadd.f32 %v1254_v21, %v1206_v19 }
 0x169   : > { %v1545_v25 = vpop.f32.mrf.mxu3  ;;  %v1207_v27 = vpop.f32.mrf.mxu1 }
 0x16a   : > { %v3935_v26 = vadd.f32 %v1594_v16, %v1545_v25  ;;  %v1294_v28 = vadd.f32 %v1255_v24, %v939_v20  ;;  %v1208_v6 = vadd.f32 %v1207_v27, %v1158_v52  ;;  %v943_v20 = vld [vmem:[#allocation2 + $0x20] sm:$0xff] }
 0x16b   : > { %v1596_v29 = vpop.f32.mrf.mxu0 }
 0x16c   : > { %1311 = vst.msk [vmem:[#allocation2] sm:$0xff] %vm1310_vm3, %v1294_v28 }
 0x16f   : > { %v1256_v42 = vpop.f32.mrf.mxu2 }
 0x170   : > { %v1257_v31 = vadd.f32 %v1256_v42, %v1208_v6 }
 0x171   : > { %v1547_v7 = vpop.f32.mrf.mxu3  ;;  %v1210_v33 = vpop.f32.mrf.mxu1 }
 0x172   : > { %v3938_v32 = vadd.f32 %v1596_v29, %v1547_v7  ;;  %v1295_v34 = vadd.f32 %v1257_v31, %v940_v30  ;;  %v1211_v38 = vadd.f32 %v1210_v33, %v1161_v8 }
 0x173   : > { %v1599_v35 = vpop.f32.mrf.mxu0 }
 0x174   : > { %1312 = vst.msk [vmem:[#allocation2 + $0x8] sm:$0xff] %vm1310_vm3, %v1295_v34  ;;  %1647 = vmatmul.bf16.gmra.mxu1 %v3807_v22  ;;  %1937 = vmatmul.bf16.gmra.mxu2 %v3730_v0  ;;  %v942_v22 = vld [vmem:[#allocation2 + $0x18] sm:$0xff]  ;;  %v945_v34 = vld [vmem:[#allocation2 + $0x30] sm:$0xff] }
 0x176   : > { %1986 = vmatmul.bf16.gmra.mxu3 %v3810_v23  ;;  %2035 = vmatmul.bf16.gmra.mxu0 %v3825_v39 }
 0x177   : > { %v1259_v48 = vpop.f32.mrf.mxu2 }
 0x178   : > { %v1260_v52 = vadd.f32 %v1259_v48, %v1211_v38 }
 0x179   : > { %v1550_v53 = vpop.f32.mrf.mxu3  ;;  %v1212_v55 = vpop.f32.mrf.mxu1 }
 0x17a   : > { %v3945_v54 = vadd.f32 %v1599_v35, %v1550_v53  ;;  %v1296_v56 = vadd.f32 %v1260_v52, %v941_v46  ;;  %v1213_v58 = vadd.f32 %v1212_v55, %v1163_v12 }
 0x17b   : > { %v1601_v57 = vpop.f32.mrf.mxu0 }
 0x17c   : > { %1313 = vst.msk [vmem:[#allocation2 + $0x10] sm:$0xff] %vm1310_vm3, %v1296_v56 }
 0x17f   : > { %v1261_v61 = vpop.f32.mrf.mxu2 }
 0x180   : > { %v1262_v0 = vadd.f32 %v1261_v61, %v1213_v58 }
 0x181   : > { %v1552_v15 = vpop.f32.mrf.mxu3  ;;  %v1215_v16 = vpop.f32.mrf.mxu1 }
 0x182   : > { %v3948_v23 = vadd.f32 %v1601_v57, %v1552_v15  ;;  %v1297_v8 = vadd.f32 %v1262_v0, %v942_v22  ;;  %v1216_v12 = vadd.f32 %v1215_v16, %v3878_v36  ;;  %v947_v0 = vld [vmem:[#allocation2 + $0x40] sm:$0xff] }
 0x183   : > { %v1604_v19 = vpop.f32.mrf.mxu0 }
 0x184   : > { %1314 = vst.msk [vmem:[#allocation2 + $0x18] sm:$0xff] %vm1310_vm3, %v1297_v8  ;;  %1652 = vmatmul.bf16.gmra.mxu1 %v3825_v39  ;;  %1942 = vmatmul.bf16.gmra.mxu2 %v3699_v43  ;;  %v944_v43 = vld [vmem:[#allocation2 + $0x28] sm:$0xff] }
 0x186   : > { %1991 = vmatmul.bf16.gmra.mxu3 %v3828_v40  ;;  %2040 = vmatmul.bf16.gmra.mxu0 %v3843_v59 }
 0x187   : > { %v1264_v21 = vpop.f32.mrf.mxu2 }
 0x188   : > { %v1265_v24 = vadd.f32 %v1264_v21, %v1216_v12 }
 0x189   : > { %v1555_v25 = vpop.f32.mrf.mxu3  ;;  %v1217_v28 = vpop.f32.mrf.mxu1 }
 0x18a   : > { %v3956_v27 = vadd.f32 %v1604_v19, %v1555_v25  ;;  %v1298_v29 = vadd.f32 %v1265_v24, %v943_v20  ;;  %v1218_v39 = vadd.f32 %v1217_v28, %v3900_v51 }
 0x18b   : > { %v1606_v6 = vpop.f32.mrf.mxu0 }
 0x18c   : > { %1315 = vst.msk [vmem:[#allocation2 + $0x20] sm:$0xff] %vm1310_vm3, %v1298_v29 }
 0x18f   : > { %v1266_v30 = vpop.f32.mrf.mxu2 }
 0x190   : > { %v1267_v40 = vadd.f32 %v1266_v30, %v1218_v39  ;;  %v949_v39 = vld [vmem:[#allocation2 + $0x50] sm:$0xff] }
 0x191   : > { %v1557_v42 = vpop.f32.mrf.mxu3  ;;  %v1220_v36 = vpop.f32.mrf.mxu1 }
 0x192   : > { %v3960_v31 = vadd.f32 %v1606_v6, %v1557_v42  ;;  %v1299_v7 = vadd.f32 %v1267_v40, %v944_v43  ;;  %v1221_v51 = vadd.f32 %v1220_v36, %v3909_v4 }
 0x193   : > { %v1609_v33 = vpop.f32.mrf.mxu0 }
 0x194   : > { %1316 = vst.msk [vmem:[#allocation2 + $0x28] sm:$0xff] %vm1310_vm3, %v1299_v7  ;;  %1657 = vmatmul.bf16.gmra.mxu1 %v3843_v59  ;;  %1947 = vmatmul.bf16.gmra.mxu2 %v3733_v1  ;;  %v946_v1 = vld [vmem:[#allocation2 + $0x38] sm:$0xff] }
 0x196   : > { %1996 = vmatmul.bf16.gmra.mxu3 %v3846_v60  ;;  %2045 = vmatmul.bf16.gmra.mxu0 %v3861_v17 }
 0x197   : > { %v1269_v35 = vpop.f32.mrf.mxu2 }
 0x198   : > { %v1270_v38 = vadd.f32 %v1269_v35, %v1221_v51  ;;  %v950_v51 = vld [vmem:[#allocation2 + $0x58] sm:$0xff] }
 0x199   : > { %v1560_v46 = vpop.f32.mrf.mxu3  ;;  %v1222_v52 = vpop.f32.mrf.mxu1 }
 0x19a   : > { %v3968_v48 = vadd.f32 %v1609_v33, %v1560_v46  ;;  %v1300_v53 = vadd.f32 %v1270_v38, %v945_v34  ;;  %v1223_v59 = vadd.f32 %v1222_v52, %v3925_v11  ;;  %v676_v34 = vld [vmem:[%s3666_s17 + $0x14] sm:$0x1] }
 0x19b   : > { %v1611_v55 = vpop.f32.mrf.mxu0 }
 0x19c   : > { %1317 = vst.msk [vmem:[#allocation2 + $0x30] sm:$0xff] %vm1310_vm3, %v1300_v53  ;;  %v2954_v53 = vld [vmem:[%s3666_s17 + $0xc] sm:$0xff] }
 0x19f   : > { %v1271_v56 = vpop.f32.mrf.mxu2 }
 0x1a0   : > { %v1272_v60 = vadd.f32 %v1271_v56, %v1223_v59  ;;  %v756_v56 = vunpack.c.l.b16 %v676_v34 }
 0x1a1   : > { %v1562_v57 = vpop.f32.mrf.mxu3  ;;  %v1225_v4 = vpop.f32.mrf.mxu1 }
 0x1a2   : > { %v3972_v58 = vadd.f32 %v1611_v55, %v1562_v57  ;;  %v1301_v22 = vadd.f32 %v1272_v60, %v946_v1  ;;  %v1226_v11 = vadd.f32 %v1225_v4, %v3896_v49  ;;  %v766_v60 = vpack.c.b16 %v756_v56, %v756_v56  ;;  %v951_v57 = vld [vmem:[#allocation2 + $0x60] sm:$0xff] }
 0x1a3   : > { %v1614_v61 = vpop.f32.mrf.mxu0 }
 0x1a4   : > { %1318 = vst.msk [vmem:[#allocation2 + $0x38] sm:$0xff] %vm1310_vm3, %v1301_v22  ;;  %1662 = vmatmul.bf16.gmra.mxu1 %v3861_v17  ;;  %1952 = vmatmul.bf16.gmra.mxu2 %v3702_v44  ;;  %v948_v44 = vld [vmem:[#allocation2 + $0x48] sm:$0xff] }
 0x1a6   : > { %2001 = vmatmul.bf16.gmra.mxu3 %v3864_v18  ;;  %2050 = vmatmul.bf16.gmra.mxu0 %v3881_v37 }
 0x1a7   : > { %v1274_v15 = vpop.f32.mrf.mxu2 }
 0x1a8   : > { %v1275_v16 = vadd.f32 %v1274_v15, %v1226_v11  ;;  %v877_v15 = vshrl.u32 %v2954_v53, 16 }
 0x1a9   : > { %v1565_v8 = vpop.f32.mrf.mxu3  ;;  %v1227_v12 = vpop.f32.mrf.mxu1 }
 0x1aa   : > { %v3980_v19 = vadd.f32 %v1614_v61, %v1565_v8  ;;  %v1302_v20 = vadd.f32 %v1275_v16, %v947_v0  ;;  %v1228_v17 = vadd.f32 %v1227_v12, %v3905_v62  ;;  %v884_v12 = vshll.u32 %v766_v60, 16 }
 0x1ab   : > { %v1616_v21 = vpop.f32.mrf.mxu0 }
 0x1ac   : > { %1319 = vst.msk [vmem:[#allocation2 + $0x40] sm:$0xff] %vm1310_vm3, %v1302_v20  ;;  %v886_v20 = vrot.slane %v884_v12, 1 }
 0x1af   : > { %v1276_v24 = vpop.f32.mrf.mxu2 }
 0x1b0   : > { %v1277_v18 = vadd.f32 %v1276_v24, %v1228_v17  ;;  %v952_v17 = vld [vmem:[#allocation2 + $0x68] sm:$0xff] }
 0x1b1   : > { %v1567_v25 = vpop.f32.mrf.mxu3  ;;  %v1230_v49 = vpop.f32.mrf.mxu1 }
 0x1b2   : > { %v3984_v28 = vadd.f32 %v1616_v21, %v1567_v25  ;;  %v1303_v29 = vadd.f32 %v1277_v18, %v948_v44  ;;  %v1231_v62 = vadd.f32 %v1230_v49, %v3921_v9  ;;  %v927_v21 = vrot.slane %v766_v60, 1 }
 0x1b3   : > { %v1619_v6 = vpop.f32.mrf.mxu0 }
 0x1b4   : > { %1320 = vst.msk [vmem:[#allocation2 + $0x48] sm:$0xff] %vm1310_vm3, %v1303_v29  ;;  %1667 = vmatmul.bf16.gmra.mxu1 %v3881_v37  ;;  %1957 = vmatmul.bf16.gmra.mxu2 %v3736_v2  ;;  %v923_v37 = vrot.slane %v3887_v45, 1 }
 0x1b6   : > { %2006 = vmatmul.bf16.gmra.mxu3 %v3884_v41  ;;  %2055 = vmatmul.bf16.gmra.mxu0 %v3912_v5  ;;  %v924_v41 = vrot.slane %v3893_v47, 1  ;;  %v879_v47 = vshll.u32 %v2954_v53, 16 }
 0x1b7   : > { %v1279_v43 = vpop.f32.mrf.mxu2 }
 0x1b8   : > { %v1280_v30 = vadd.f32 %v1279_v43, %v1231_v62  ;;  %v925_v1 = vsel %vm898_vm2, %v923_v37, %v924_v41  ;;  %v881_v16 = vrot.slane %v879_v47, 1  ;;  %v953_v43 = vld [vmem:[#allocation2 + $0x70] sm:$0xff] }
 0x1b9   : > { %v1570_v40 = vpop.f32.mrf.mxu3  ;;  %v1232_v36 = vpop.f32.mrf.mxu1 }
 0x1ba   : > { %v3992_v42 = vadd.f32 %v1619_v6, %v1570_v40  ;;  %v1304_v7 = vadd.f32 %v1280_v30, %v949_v39  ;;  %v1233_v2 = vadd.f32 %v1232_v36, %v3927_v13 }
 0x1bb   : > { %v1621_v33 = vpop.f32.mrf.mxu0 }
 0x1bc   : > { %1321 = vst.msk [vmem:[#allocation2 + $0x50] sm:$0xff] %vm1310_vm3, %v1304_v7 }
 0x1bf   : > { %v1281_v9 = vpop.f32.mrf.mxu2 }
 0x1c0   : > { %v1282_v35 = vadd.f32 %v1281_v9, %v1233_v2 }
 0x1c1   : > { %v1572_v38 = vpop.f32.mrf.mxu3  ;;  %v1235_v52 = vpop.f32.mrf.mxu1 }
 0x1c2   : > { %v3999_v46 = vadd.f32 %v1621_v33, %v1572_v38  ;;  %v1305_v55 = vadd.f32 %v1282_v35, %v950_v51  ;;  %v1236_v13 = vadd.f32 %v1235_v52, %v3898_v50  ;;  %v926_v50 = vrot.slane %v2954_v53, 1  ;;  %v954_v51 = vld [vmem:[#allocation2 + $0x78] sm:$0xff] }
 0x1c3   : > { %v1624_v59 = vpop.f32.mrf.mxu0 }
 0x1c4   : > { %1322 = vst.msk [vmem:[#allocation2 + $0x58] sm:$0xff] %vm1310_vm3, %v1305_v55  ;;  %1672 = vmatmul.bf16.gmra.mxu1 %v3912_v5  ;;  %1962 = vmatmul.bf16.gmra.mxu2 %v3887_v45  ;;  %v882_v45 = vor.u32 %v881_v16, %v877_v15  ;;  %v928_v39 = vsel %vm898_vm2, %v926_v50, %v927_v21 }
 0x1c6   : > { %2011 = vmatmul.bf16.gmra.mxu3 %v3915_v3  ;;  %2060 = vmatmul.bf16.gmra.mxu0 %v925_v1  ;;  %v887_v62 = vsel %vm767_vm1, %v882_v45, %v886_v20 }
 0x1c7   : > { %v1284_v4 = vpop.f32.mrf.mxu2 }
 0x1c8   : > { %v1285_v22 = vadd.f32 %v1284_v4, %v1236_v13 }
 0x1c9   : > { %v1575_v61 = vpop.f32.mrf.mxu3  ;;  %v1237_v0 = vpop.f32.mrf.mxu1 }
 0x1ca   : > { %v4008_v11 = vadd.f32 %v1624_v59, %v1575_v61  ;;  %v1306_v8 = vadd.f32 %v1285_v22, %v951_v57  ;;  %v1238_v3 = vadd.f32 %v1237_v0, %v3907_v63  ;;  %v1327_v59 = vld [vmem:[#allocation2] sm:$0xff]  ;;  %v1328_v22 = vld [vmem:[#allocation2 + $0x8] sm:$0xff] }
 0x1cb   : > { %v1626_v5 = vpop.f32.mrf.mxu0 }
 0x1cc   : > { %1323 = vst.msk [vmem:[#allocation2 + $0x60] sm:$0xff] %vm1310_vm3, %v1306_v8 }
 0x1cf   : > { %v1286_v44 = vpop.f32.mrf.mxu2 }
 0x1d0   : > { %v1287_v24 = vadd.f32 %v1286_v44, %v1238_v3  ;;  %v1329_v3 = vld [vmem:[#allocation2 + $0x10] sm:$0xff] }
 0x1d1   : > { %v1577_v18 = vpop.f32.mrf.mxu3  ;;  %v1240_v49 = vpop.f32.mrf.mxu1 }
 0x1d2   : > { %v4012_v25 = vadd.f32 %v1626_v5, %v1577_v18  ;;  %v1307_v29 = vadd.f32 %v1287_v24, %v952_v17  ;;  %v1241_v63 = vadd.f32 %v1240_v49, %v3923_v10 }
 0x1d3   : > { %v1629_v6 = vpop.f32.mrf.mxu0 }
 0x1d4   : > { %1324 = vst.msk [vmem:[#allocation2 + $0x68] sm:$0xff] %vm1310_vm3, %v1307_v29  ;;  %1677 = vmatmul.bf16.gmra.mxu1 %v925_v1  ;;  %1967 = vmatmul.bf16.gmra.mxu2 %v2954_v53 }
 0x1d6   : > { %2016 = vmatmul.bf16.gmra.mxu3 %v887_v62  ;;  %2065 = vmatmul.bf16.gmra.mxu0 %v928_v39  ;;  %v1330_v62 = vld [vmem:[#allocation2 + $0x18] sm:$0xff] }
 0x1d7   : > { %v1289_v30 = vpop.f32.mrf.mxu2 }
 0x1d8   : > { %v1290_v40 = vadd.f32 %v1289_v30, %v1241_v63 }
 0x1d9   : > { %v1580_v36 = vpop.f32.mrf.mxu3  ;;  %v1242_v33 = vpop.f32.mrf.mxu1 }
 0x1da   : > { %v4018_v7 = vadd.f32 %v1629_v6, %v1580_v36  ;;  %v1308_v2 = vadd.f32 %v1290_v40, %v953_v43  ;;  %v1243_v41 = vadd.f32 %v1242_v33, %v3929_v14 }
 0x1db   : > { %v1631_v37 = vpop.f32.mrf.mxu0 }
 0x1dc   : > { %1325 = vst.msk [vmem:[#allocation2 + $0x70] sm:$0xff] %vm1310_vm3, %v1308_v2 }
 0x1df   : > { %v1291_v9 = vpop.f32.mrf.mxu2 }
 0x1e0   : > { %v1292_v34 = vadd.f32 %v1291_v9, %v1243_v41 }
 0x1e1   : > { %v1582_v35 = vpop.f32.mrf.mxu3  ;;  %v1643_v10 = vpop.f32.mrf.mxu1 }
 0x1e2   : > { %v4022_v38 = vadd.f32 %v1631_v37, %v1582_v35  ;;  %v1309_v52 = vadd.f32 %v1292_v34, %v954_v51  ;;  %v1644_v53 = vadd.f32 %v1643_v10, %v3935_v26  ;;  %v1331_v37 = vld [vmem:[#allocation2 + $0x20] sm:$0xff] }
 0x1e3   : > { %v2031_v55 = vpop.f32.mrf.mxu0 }
 0x1e4   : > { %1326 = vst.msk [vmem:[#allocation2 + $0x78] sm:$0xff] %vm1310_vm3, %v1309_v52  ;;  %v1683_v1 = vadd.f32 %v1644_v53, %v1327_v59 }
 0x1e6   : > { %1699 = vst.msk [vmem:[#allocation2] sm:$0xff] %vm1310_vm3, %v1683_v1  ;;  %v1332_v1 = vld [vmem:[#allocation2 + $0x28] sm:$0xff] }
 0x1e7   : > { %v1933_v56 = vpop.f32.mrf.mxu2 }
 0x1e9   : > { %v1982_v47 = vpop.f32.mrf.mxu3  ;;  %v1645_v13 = vpop.f32.mrf.mxu1 }
 0x1ea   : > { %v1983_v14 = vadd.f32 %v1982_v47, %v1933_v56  ;;  %v1646_v60 = vadd.f32 %v1645_v13, %v3938_v32 }
 0x1eb   : > { %v2033_v57 = vpop.f32.mrf.mxu0 }
 0x1ec   : > { %v2032_v4 = vadd.f32 %v2031_v55, %v1983_v14  ;;  %v1684_v61 = vadd.f32 %v1646_v60, %v1328_v22 }
 0x1ed   : > { %v1715_v0 = vld [vmem:[#allocation2] sm:$0xff] }
 0x1ee   : > { %v2071_v15 = vadd.f32 %v2032_v4, %v1715_v0  ;;  %1700 = vst.msk [vmem:[#allocation2 + $0x8] sm:$0xff] %vm1310_vm3, %v1684_v61  ;;  %v1333_v61 = vld [vmem:[#allocation2 + $0x30] sm:$0xff] }
 0x1ef   : > { %v1935_v26 = vpop.f32.mrf.mxu2 }
 0x1f0   : > { %2087 = vst.msk [vmem:[#allocation2] sm:$0xff] %vm1310_vm3, %v2071_v15 }
 0x1f1   : > { %v1984_v16 = vpop.f32.mrf.mxu3  ;;  %v1648_v5 = vpop.f32.mrf.mxu1 }
 0x1f2   : > { %v1985_v8 = vadd.f32 %v1984_v16, %v1935_v26  ;;  %v1649_v12 = vadd.f32 %v1648_v5, %v3945_v54 }
 0x1f3   : > { %v2036_v45 = vpop.f32.mrf.mxu0 }
 0x1f4   : > { %v2034_v20 = vadd.f32 %v2033_v57, %v1985_v8  ;;  %v1685_v32 = vadd.f32 %v1649_v12, %v1329_v3 }
 0x1f5   : > { %v1716_v50 = vld [vmem:[#allocation2 + $0x8] sm:$0xff] }
 0x1f6   : > { %v2072_v21 = vadd.f32 %v2034_v20, %v1716_v50  ;;  %1701 = vst.msk [vmem:[#allocation2 + $0x10] sm:$0xff] %vm1310_vm3, %v1685_v32  ;;  %v1334_v32 = vld [vmem:[#allocation2 + $0x38] sm:$0xff] }
 0x1f7   : > { %v1938_v17 = vpop.f32.mrf.mxu2 }
 0x1f8   : > { %2088 = vst.msk [vmem:[#allocation2 + $0x8] sm:$0xff] %vm1310_vm3, %v2072_v21 }
 0x1f9   : > { %v1987_v44 = vpop.f32.mrf.mxu3  ;;  %v1650_v18 = vpop.f32.mrf.mxu1 }
 0x1fa   : > { %v1988_v24 = vadd.f32 %v1987_v44, %v1938_v17  ;;  %v1651_v49 = vadd.f32 %v1650_v18, %v3948_v23 }
 0x1fb   : > { %v2038_v29 = vpop.f32.mrf.mxu0 }
 0x1fc   : > { %v2037_v6 = vadd.f32 %v2036_v45, %v1988_v24  ;;  %v1686_v54 = vadd.f32 %v1651_v49, %v1330_v62 }
 0x1fd   : > { %v1717_v39 = vld [vmem:[#allocation2 + $0x10] sm:$0xff] }
 0x1fe   : > { %v2073_v63 = vadd.f32 %v2037_v6, %v1717_v39  ;;  %1702 = vst.msk [vmem:[#allocation2 + $0x18] sm:$0xff] %vm1310_vm3, %v1686_v54  ;;  %v1335_v6 = vld [vmem:[#allocation2 + $0x40] sm:$0xff] }
 0x1ff   : > { %v1940_v43 = vpop.f32.mrf.mxu2 }
 0x200   : > { %2089 = vst.msk [vmem:[#allocation2 + $0x10] sm:$0xff] %vm1310_vm3, %v2073_v63 }
 0x201   : > { %v1989_v30 = vpop.f32.mrf.mxu3  ;;  %v1653_v36 = vpop.f32.mrf.mxu1 }
 0x202   : > { %v1990_v40 = vadd.f32 %v1989_v30, %v1940_v43  ;;  %v1654_v33 = vadd.f32 %v1653_v36, %v3956_v27 }
 0x203   : > { %v2041_v2 = vpop.f32.mrf.mxu0 }
 0x204   : > { %v2039_v41 = vadd.f32 %v2038_v29, %v1990_v40  ;;  %v1687_v23 = vadd.f32 %v1654_v33, %v1331_v37  ;;  %v1336_v37 = vld [vmem:[#allocation2 + $0x48] sm:$0xff] }
 0x205   : > { %v1718_v51 = vld [vmem:[#allocation2 + $0x18] sm:$0xff] }
 0x206   : > { %v2074_v9 = vadd.f32 %v2039_v41, %v1718_v51  ;;  %1703 = vst.msk [vmem:[#allocation2 + $0x20] sm:$0xff] %vm1310_vm3, %v1687_v23 }
 0x207   : > { %v1943_v34 = vpop.f32.mrf.mxu2 }
 0x208   : > { %2090 = vst.msk [vmem:[#allocation2 + $0x18] sm:$0xff] %vm1310_vm3, %v2074_v9 }
 0x209   : > { %v1992_v35 = vpop.f32.mrf.mxu3  ;;  %v1655_v52 = vpop.f32.mrf.mxu1 }
 0x20a   : > { %v1993_v10 = vadd.f32 %v1992_v35, %v1943_v34  ;;  %v1656_v53 = vadd.f32 %v1655_v52, %v3960_v31 }
 0x20b   : > { %v2043_v55 = vpop.f32.mrf.mxu0 }
 0x20c   : > { %v2042_v59 = vadd.f32 %v2041_v2, %v1993_v10  ;;  %v1688_v27 = vadd.f32 %v1656_v53, %v1332_v1  ;;  %v1337_v53 = vld [vmem:[#allocation2 + $0x50] sm:$0xff] }
 0x20d   : > { %v1719_v56 = vld [vmem:[#allocation2 + $0x20] sm:$0xff] }
 0x20e   : > { %v2075_v47 = vadd.f32 %v2042_v59, %v1719_v56  ;;  %1704 = vst.msk [vmem:[#allocation2 + $0x28] sm:$0xff] %vm1310_vm3, %v1688_v27 }
 0x20f   : > { %v1945_v14 = vpop.f32.mrf.mxu2 }
 0x210   : > { %2091 = vst.msk [vmem:[#allocation2 + $0x20] sm:$0xff] %vm1310_vm3, %v2075_v47 }
 0x211   : > { %v1994_v13 = vpop.f32.mrf.mxu3  ;;  %v1658_v57 = vpop.f32.mrf.mxu1 }
 0x212   : > { %v1995_v60 = vadd.f32 %v1994_v13, %v1945_v14  ;;  %v1659_v4 = vadd.f32 %v1658_v57, %v3968_v48  ;;  %v1338_v57 = vld [vmem:[#allocation2 + $0x58] sm:$0xff] }
 0x213   : > { %v2046_v22 = vpop.f32.mrf.mxu0 }
 0x214   : > { %v2044_v0 = vadd.f32 %v2043_v55, %v1995_v60  ;;  %v1689_v31 = vadd.f32 %v1659_v4, %v1333_v61 }
 0x215   : > { %v1720_v15 = vld [vmem:[#allocation2 + $0x28] sm:$0xff] }
 0x216   : > { %v2076_v26 = vadd.f32 %v2044_v0, %v1720_v15  ;;  %1705 = vst.msk [vmem:[#allocation2 + $0x30] sm:$0xff] %vm1310_vm3, %v1689_v31 }
 0x217   : > { %v1948_v16 = vpop.f32.mrf.mxu2 }
 0x218   : > { %2092 = vst.msk [vmem:[#allocation2 + $0x28] sm:$0xff] %vm1310_vm3, %v2076_v26 }
 0x219   : > { %v1997_v8 = vpop.f32.mrf.mxu3  ;;  %v1660_v12 = vpop.f32.mrf.mxu1 }
 0x21a   : > { %v1998_v5 = vadd.f32 %v1997_v8, %v1948_v16  ;;  %v1661_v45 = vadd.f32 %v1660_v12, %v3972_v58  ;;  %v1339_v8 = vld [vmem:[#allocation2 + $0x60] sm:$0xff] }
 0x21b   : > { %v2048_v3 = vpop.f32.mrf.mxu0 }
 0x21c   : > { %v2047_v20 = vadd.f32 %v2046_v22, %v1998_v5  ;;  %v1690_v48 = vadd.f32 %v1661_v45, %v1334_v32 }
 0x21d   : > { %v1721_v50 = vld [vmem:[#allocation2 + $0x30] sm:$0xff] }
 0x21e   : > { %v2077_v21 = vadd.f32 %v2047_v20, %v1721_v50  ;;  %1706 = vst.msk [vmem:[#allocation2 + $0x38] sm:$0xff] %vm1310_vm3, %v1690_v48 }
 0x21f   : > { %v1950_v17 = vpop.f32.mrf.mxu2 }
 0x220   : > { %2093 = vst.msk [vmem:[#allocation2 + $0x30] sm:$0xff] %vm1310_vm3, %v2077_v21 }
 0x221   : > { %v1999_v44 = vpop.f32.mrf.mxu3  ;;  %v1663_v18 = vpop.f32.mrf.mxu1 }
 0x222   : > { %v2000_v24 = vadd.f32 %v1999_v44, %v1950_v17  ;;  %v1664_v49 = vadd.f32 %v1663_v18, %v3980_v19  ;;  %v1340_v44 = vld [vmem:[#allocation2 + $0x68] sm:$0xff] }
 0x223   : > { %v2051_v29 = vpop.f32.mrf.mxu0 }
 0x224   : > { %v2049_v62 = vadd.f32 %v2048_v3, %v2000_v24  ;;  %v1691_v58 = vadd.f32 %v1664_v49, %v1335_v6 }
 0x225   : > { %v1722_v54 = vld [vmem:[#allocation2 + $0x38] sm:$0xff] }
 0x226   : > { %v2078_v39 = vadd.f32 %v2049_v62, %v1722_v54  ;;  %1707 = vst.msk [vmem:[#allocation2 + $0x40] sm:$0xff] %vm1310_vm3, %v1691_v58 }
 0x227   : > { %v1953_v63 = vpop.f32.mrf.mxu2 }
 0x228   : > { %2094 = vst.msk [vmem:[#allocation2 + $0x38] sm:$0xff] %vm1310_vm3, %v2078_v39  ;;  %v1341_v39 = vld [vmem:[#allocation2 + $0x70] sm:$0xff] }
 0x229   : > { %v2002_v43 = vpop.f32.mrf.mxu3  ;;  %v1665_v40 = vpop.f32.mrf.mxu1 }
 0x22a   : > { %v2003_v30 = vadd.f32 %v2002_v43, %v1953_v63  ;;  %v1666_v36 = vadd.f32 %v1665_v40, %v3984_v28 }
 0x22b   : > { %v2053_v33 = vpop.f32.mrf.mxu0 }
 0x22c   : > { %v2052_v2 = vadd.f32 %v2051_v29, %v2003_v30  ;;  %v1692_v19 = vadd.f32 %v1666_v36, %v1336_v37 }
 0x22d   : > { %v1723_v41 = vld [vmem:[#allocation2 + $0x40] sm:$0xff] }
 0x22e   : > { %v2079_v23 = vadd.f32 %v2052_v2, %v1723_v41  ;;  %1708 = vst.msk [vmem:[#allocation2 + $0x48] sm:$0xff] %vm1310_vm3, %v1692_v19 }
 0x22f   : > { %v1955_v51 = vpop.f32.mrf.mxu2 }
 0x230   : > { %2095 = vst.msk [vmem:[#allocation2 + $0x40] sm:$0xff] %vm1310_vm3, %v2079_v23  ;;  %v1342_v23 = vld [vmem:[#allocation2 + $0x78] sm:$0xff] }
 0x231   : > { %v2004_v9 = vpop.f32.mrf.mxu3  ;;  %v1668_v35 = vpop.f32.mrf.mxu1 }
 0x232   : > { %v2005_v34 = vadd.f32 %v2004_v9, %v1955_v51  ;;  %v1669_v10 = vadd.f32 %v1668_v35, %v3992_v42 }
 0x233   : > { %v2056_v52 = vpop.f32.mrf.mxu0 }
 0x234   : > { %v2054_v55 = vadd.f32 %v2053_v33, %v2005_v34  ;;  %v1693_v28 = vadd.f32 %v1669_v10, %v1337_v53 }
 0x235   : > { %v1724_v59 = vld [vmem:[#allocation2 + $0x48] sm:$0xff] }
 0x236   : > { %v2080_v1 = vadd.f32 %v2054_v55, %v1724_v59  ;;  %1709 = vst.msk [vmem:[#allocation2 + $0x50] sm:$0xff] %vm1310_vm3, %v1693_v28 }
 0x237   : > { %v1958_v27 = vpop.f32.mrf.mxu2 }
 0x238   : > { %2096 = vst.msk [vmem:[#allocation2 + $0x48] sm:$0xff] %vm1310_vm3, %v2080_v1 }
 0x239   : > { %v2007_v56 = vpop.f32.mrf.mxu3  ;;  %v1670_v14 = vpop.f32.mrf.mxu1 }
 0x23a   : > { %v2008_v47 = vadd.f32 %v2007_v56, %v1958_v27  ;;  %v1671_v13 = vadd.f32 %v1670_v14, %v3999_v46 }
 0x23b   : > { %v2058_v4 = vpop.f32.mrf.mxu0 }
 0x23c   : > { %v2057_v60 = vadd.f32 %v2056_v52, %v2008_v47  ;;  %v1694_v42 = vadd.f32 %v1671_v13, %v1338_v57 }
 0x23d   : > { %v1725_v22 = vld [vmem:[#allocation2 + $0x50] sm:$0xff] }
 0x23e   : > { %v2081_v61 = vadd.f32 %v2057_v60, %v1725_v22  ;;  %1710 = vst.msk [vmem:[#allocation2 + $0x58] sm:$0xff] %vm1310_vm3, %v1694_v42 }
 0x23f   : > { %v1960_v0 = vpop.f32.mrf.mxu2 }
 0x240   : > { %2097 = vst.msk [vmem:[#allocation2 + $0x50] sm:$0xff] %vm1310_vm3, %v2081_v61 }
 0x241   : > { %v2009_v31 = vpop.f32.mrf.mxu3  ;;  %v1673_v26 = vpop.f32.mrf.mxu1 }
 0x242   : > { %v2010_v15 = vadd.f32 %v2009_v31, %v1960_v0  ;;  %v1674_v16 = vadd.f32 %v1673_v26, %v4008_v11 }
 0x243   : > { %v2061_v45 = vpop.f32.mrf.mxu0 }
 0x244   : > { %v2059_v5 = vadd.f32 %v2058_v4, %v2010_v15  ;;  %v1695_v12 = vadd.f32 %v1674_v16, %v1339_v8 }
 0x245   : > { %v1726_v46 = vld [vmem:[#allocation2 + $0x58] sm:$0xff] }
 0x246   : > { %v2082_v3 = vadd.f32 %v2059_v5, %v1726_v46  ;;  %1711 = vst.msk [vmem:[#allocation2 + $0x60] sm:$0xff] %vm1310_vm3, %v1695_v12 }
 0x247   : > { %v1963_v20 = vpop.f32.mrf.mxu2 }
 0x248   : > { %2098 = vst.msk [vmem:[#allocation2 + $0x58] sm:$0xff] %vm1310_vm3, %v2082_v3 }
 0x249   : > { %v2012_v32 = vpop.f32.mrf.mxu3  ;;  %v1675_v50 = vpop.f32.mrf.mxu1 }
 0x24a   : > { %v2013_v48 = vadd.f32 %v2012_v32, %v1963_v20  ;;  %v1676_v21 = vadd.f32 %v1675_v50, %v4012_v25 }
 0x24b   : > { %v2063_v49 = vpop.f32.mrf.mxu0 }
 0x24c   : > { %v2062_v17 = vadd.f32 %v2061_v45, %v2013_v48  ;;  %v1696_v24 = vadd.f32 %v1676_v21, %v1340_v44 }
 0x24d   : > { %v1727_v11 = vld [vmem:[#allocation2 + $0x60] sm:$0xff] }
 0x24e   : > { %v2083_v18 = vadd.f32 %v2062_v17, %v1727_v11  ;;  %1712 = vst.msk [vmem:[#allocation2 + $0x68] sm:$0xff] %vm1310_vm3, %v1696_v24 }
 0x24f   : > { %v1965_v29 = vpop.f32.mrf.mxu2 }
 0x250   : > { %2099 = vst.msk [vmem:[#allocation2 + $0x60] sm:$0xff] %vm1310_vm3, %v2083_v18 }
 0x251   : > { %v2014_v6 = vpop.f32.mrf.mxu3  ;;  %v1678_v58 = vpop.f32.mrf.mxu1 }
 0x252   : > { %v2015_v62 = vadd.f32 %v2014_v6, %v1965_v29  ;;  %v1679_v54 = vadd.f32 %v1678_v58, %v4018_v7 }
 0x253   : > { %v2066_v33 = vpop.f32.mrf.mxu0 }
 0x254   : > { %v2064_v63 = vadd.f32 %v2063_v49, %v2015_v62  ;;  %v1697_v43 = vadd.f32 %v1679_v54, %v1341_v39 }
 0x255   : > { %v1728_v25 = vld [vmem:[#allocation2 + $0x68] sm:$0xff] }
 0x256   : > { %v2084_v30 = vadd.f32 %v2064_v63, %v1728_v25  ;;  %1713 = vst.msk [vmem:[#allocation2 + $0x70] sm:$0xff] %vm1310_vm3, %v1697_v43 }
 0x257   : > { %v1968_v40 = vpop.f32.mrf.mxu2 }
 0x258   : > { %2100 = vst.msk [vmem:[#allocation2 + $0x68] sm:$0xff] %vm1310_vm3, %v2084_v30 }
 0x259   : > { %v2017_v36 = vpop.f32.mrf.mxu3  ;;  %v1680_v37 = vpop.f32.mrf.mxu1 }
 0x25a   : > { %v2018_v2 = vadd.f32 %v2017_v36, %v1968_v40  ;;  %v1681_v19 = vadd.f32 %v1680_v37, %v4022_v38 }
 0x25b   : > { %v2068_v52 = vpop.f32.mrf.mxu0 }
 0x25c   : > { %v2067_v41 = vadd.f32 %v2066_v33, %v2018_v2  ;;  %v1698_v51 = vadd.f32 %v1681_v19, %v1342_v23 }
 0x25d   : > { %v1729_v7 = vld [vmem:[#allocation2 + $0x70] sm:$0xff] }
 0x25e   : > { %v2085_v9 = vadd.f32 %v2067_v41, %v1729_v7  ;;  %1714 = vst.msk [vmem:[#allocation2 + $0x78] sm:$0xff] %vm1310_vm3, %v1698_v51 }
 0x25f   : > { %v1970_v34 = vpop.f32.mrf.mxu2 }
 0x260   : > { %2101 = vst.msk [vmem:[#allocation2 + $0x70] sm:$0xff] %vm1310_vm3, %v2085_v9 }
 0x261   : > { %v2019_v35 = vpop.f32.mrf.mxu3 }
 0x262   : > { %v2020_v10 = vadd.f32 %v2019_v35, %v1970_v34 }
 0x264   : > { %v2069_v53 = vadd.f32 %v2068_v52, %v2020_v10  ;;  %2106 = sbr.rel (%p2922_p10) target bundleno = 788 (0x314), region = 141 }
 0x265   : > { %v1730_v55 = vld [vmem:[#allocation2 + $0x78] sm:$0xff] }
 0x266   : > { %v2086_v28 = vadd.f32 %v2069_v53, %v1730_v55 }
 0x268   : > { %2102 = vst.msk [vmem:[#allocation2 + $0x78] sm:$0xff] %vm1310_vm3, %v2086_v28 }
 0x269   : > { %v3028_v38 = vld [vmem:[%s4171_s20 + $0x8] sm:$0xff]  ;;  %v3027_v59 = vld [vmem:[%s4171_s20] sm:$0xff]  ;;  %v2109_v44 = vld [vmem:[#allocation2 + $0x10] sm:$0xff] }
 0x26a   : > { %v2107_v1 = vld [vmem:[#allocation2] sm:$0xff]  ;;  %v2108_v27 = vld [vmem:[#allocation2 + $0x8] sm:$0xff]  ;;  %2217 = vmatpush.bf16.msra.mxu0 %v3028_v38  ;;  %3053 = vmatpush.bf16.msra.mxu1 %v3028_v38  ;;  %v2110_v24 = vld [vmem:[#allocation2 + $0x18] sm:$0xff] }
 0x26b   : > { %v3226_v56 = vld [vmem:[%s4172_s4] ss:$0 sm:$0xff]  ;;  %v2112_v14 = vld [vmem:[#allocation2 + $0x28] sm:$0xff]  ;;  %3054 = vmatpush.bf16.msra.mxu2 %v3028_v38  ;;  %3055 = vmatpush.bf16.msra.mxu3 %v3028_v38  ;;  %v2113_v11 = vld [vmem:[#allocation2 + $0x30] sm:$0xff] }
 0x26c   : > { %v2111_v47 = vld [vmem:[#allocation2 + $0x20] sm:$0xff]  ;;  %v2127_v60 = vadd.f32 %v3226_v56, %v2107_v1  ;;  %v2128_v57 = vadd.f32 %v3226_v56, %v2108_v27  ;;  %v2116_v42 = vld [vmem:[#allocation2 + $0x48] sm:$0xff]  ;;  %v2132_v0 = vadd.f32 %v3226_v56, %v2112_v14  ;;  %v2114_v18 = vld [vmem:[#allocation2 + $0x38] sm:$0xff]  ;;  %v2129_v58 = vadd.f32 %v3226_v56, %v2109_v44 }
 0x26d   : > { %v2115_v13 = vld [vmem:[#allocation2 + $0x40] sm:$0xff]  ;;  %v2131_v4 = vadd.f32 %v3226_v56, %v2111_v47  ;;  %v2120_v61 = vld [vmem:[#allocation2 + $0x68] sm:$0xff]  ;;  %v2136_v15 = vadd.f32 %v3226_v56, %v2116_v42  ;;  %v2117_v49 = vld [vmem:[#allocation2 + $0x50] sm:$0xff]  ;;  %v2130_v54 = vadd.f32 %v3226_v56, %v2110_v24  ;;  %v2133_v39 = vadd.f32 %v3226_v56, %v2113_v11 }
 0x26e   : > { %v2119_v22 = vld [vmem:[#allocation2 + $0x60] sm:$0xff]  ;;  %v2135_v31 = vadd.f32 %v3226_v56, %v2115_v13  ;;  %v2143_v16 = vmax.f32 %v2127_v60, 0.0  ;;  %v2144_v8 = vmax.f32 %v2128_v57, 0.0  ;;  %v2140_v12 = vadd.f32 %v3226_v56, %v2120_v61  ;;  %2218 = vmatpush.bf16.msra.mxu0 %v3027_v59  ;;  %3056 = vmatpush.bf16.msra.mxu1 %v3027_v59  ;;  %v2118_v29 = vld [vmem:[#allocation2 + $0x58] sm:$0xff]  ;;  %v2121_v6 = vld [vmem:[#allocation2 + $0x70] sm:$0xff] }
 0x26f   : > { %v2139_v26 = vadd.f32 %v3226_v56, %v2119_v22  ;;  %v2147_v5 = vmax.f32 %v2131_v4, 0.0  ;;  %v2148_v46 = vmax.f32 %v2132_v0, 0.0  ;;  %v2152_v3 = vmax.f32 %v2136_v15, 0.0  ;;  %3057 = vmatpush.bf16.msra.mxu2 %v3027_v59  ;;  %3058 = vmatpush.bf16.msra.mxu3 %v3027_v59  ;;  %v2122_v62 = vld [vmem:[#allocation2 + $0x78] sm:$0xff]  ;;  %v3227_v10 = vld [vmem:[%s4173_s5] ss:$0 sm:$0xff] }
 0x270   : > { %v2151_v45 = vmax.f32 %v2135_v31, 0.0  ;;  %v2159_v32 = vpack.c.bf16 %v2144_v8, %v2143_v16  ;;  %v2156_v48 = vmax.f32 %v2140_v12, 0.0  ;;  %v2134_v63 = vadd.f32 %v3226_v56, %v2114_v18 }
 0x271   : > { %v2155_v20 = vmax.f32 %v2139_v26, 0.0  ;;  %v2161_v50 = vpack.c.bf16 %v2148_v46, %v2147_v5  ;;  %v2137_v43 = vadd.f32 %v3226_v56, %v2117_v49  ;;  %v2138_v25 = vadd.f32 %v3226_v56, %v2118_v29 }
 0x272   : > { %v2163_v21 = vpack.c.bf16 %v2152_v3, %v2151_v45  ;;  %2931 = vmatmul.msk.bf16.vlgmr.msra.gmra.mxu0 %vm1310_vm3, %v2159_v32  ;;  %v2141_v30 = vadd.f32 %v3226_v56, %v2121_v6  ;;  %v2142_v40 = vadd.f32 %v3226_v56, %v2122_v62  ;;  %v2145_v36 = vmax.f32 %v2129_v58, 0.0 }
 0x273   : > { %v2165_v17 = vpack.c.bf16 %v2156_v48, %v2155_v20  ;;  %2933 = vmatmul.msk.bf16.vlgmr.msra.gmra.mxu1 %vm1310_vm3, %v2161_v50  ;;  %v2146_v33 = vmax.f32 %v2130_v54, 0.0  ;;  %v2149_v2 = vmax.f32 %v2133_v39, 0.0  ;;  %v2150_v37 = vmax.f32 %v2134_v63, 0.0 }
 0x274   : > { %2935 = vmatmul.msk.bf16.vlgmr.msra.gmra.mxu2 %vm1310_vm3, %v2163_v21  ;;  %v2153_v19 = vmax.f32 %v2137_v43, 0.0  ;;  %v2154_v41 = vmax.f32 %v2138_v25, 0.0  ;;  %v2157_v23 = vmax.f32 %v2141_v30, 0.0  ;;  %v2158_v51 = vmax.f32 %v2142_v40, 0.0 }
 0x275   : > { %2937 = vmatmul.msk.bf16.vlgmr.msra.gmra.mxu3 %vm1310_vm3, %v2165_v17  ;;  %v2160_v7 = vpack.c.bf16 %v2146_v33, %v2145_v36  ;;  %v2162_v9 = vpack.c.bf16 %v2150_v37, %v2149_v2 }
 0x276   : > { %v2164_v34 = vpack.c.bf16 %v2154_v41, %v2153_v19  ;;  %v2166_v35 = vpack.c.bf16 %v2158_v51, %v2157_v23 }
 0x282   : > { %2932 = vmatmul.msk.bf16.gmra.mxu0 %vm1310_vm3, %v2160_v7 }
 0x283   : > { %2934 = vmatmul.msk.bf16.gmra.mxu1 %vm1310_vm3, %v2162_v9 }
 0x284   : > { %2936 = vmatmul.msk.bf16.gmra.mxu2 %vm1310_vm3, %v2164_v34 }
 0x285   : > { %2938 = vmatmul.msk.bf16.gmra.mxu3 %vm1310_vm3, %v2166_v35 }
 0x2ef   : > { %v2220_v52 = vpop.f32.mrf.mxu0 }
 0x2f0   : > { %v2221_v53 = vadd.f32 %v3227_v10, %v2220_v52  ;;  %v2230_v55 = vpop.f32.mrf.mxu1 }
 0x2f1   : > { %v2231_v28 = vadd.f32 %v3227_v10, %v2230_v55 }
 0x2f2   : > { %2260 = vst [vmem:[%s3662_s2] sm:$0xff] %v2221_v53 }
 0x2f3   : > { %2264 = vst [vmem:[%s3662_s2 + $0x20] sm:$0xff] %v2231_v28 }
 0x2f7   : > { %v2240_v38 = vpop.f32.mrf.mxu2  ;;  %v2222_v27 = vpop.f32.mrf.mxu0 }
 0x2f8   : > { %v2241_v59 = vadd.f32 %v3227_v10, %v2240_v38  ;;  %v2250_v1 = vpop.f32.mrf.mxu3  ;;  %v2223_v47 = vadd.f32 %v3227_v10, %v2222_v27  ;;  %v2232_v14 = vpop.f32.mrf.mxu1 }
 0x2f9   : > { %v2251_v56 = vadd.f32 %v3227_v10, %v2250_v1  ;;  %v2233_v13 = vadd.f32 %v3227_v10, %v2232_v14 }
 0x2fa   : > { %2268 = vst [vmem:[%s3662_s2 + $0x40] sm:$0xff] %v2241_v59 }
 0x2fb   : > { %2272 = vst [vmem:[%s3662_s2 + $0x60] sm:$0xff] %v2251_v56 }
 0x2fc   : > { %2261 = vst [vmem:[%s3662_s2 + $0x8] sm:$0xff] %v2223_v47 }
 0x2fd   : > { %2265 = vst [vmem:[%s3662_s2 + $0x28] sm:$0xff] %v2233_v13 }
 0x2ff   : > { %v2242_v60 = vpop.f32.mrf.mxu2  ;;  %v2225_v42 = vpop.f32.mrf.mxu0 }
 0x300   : > { %v2243_v57 = vadd.f32 %v3227_v10, %v2242_v60  ;;  %v2252_v4 = vpop.f32.mrf.mxu3  ;;  %v2226_v61 = vadd.f32 %v3227_v10, %v2225_v42  ;;  %v2235_v0 = vpop.f32.mrf.mxu1 }
 0x301   : > { %v2253_v22 = vadd.f32 %v3227_v10, %v2252_v4  ;;  %v2236_v31 = vadd.f32 %v3227_v10, %v2235_v0 }
 0x302   : > { %2269 = vst [vmem:[%s3662_s2 + $0x48] sm:$0xff] %v2243_v57 }
 0x303   : > { %2273 = vst [vmem:[%s3662_s2 + $0x68] sm:$0xff] %v2253_v22 }
 0x304   : > { %2262 = vst [vmem:[%s3662_s2 + $0x10] sm:$0xff] %v2226_v61 }
 0x305   : > { %2266 = vst [vmem:[%s3662_s2 + $0x30] sm:$0xff] %v2236_v31 }
 0x307   : > { %v2245_v15 = vpop.f32.mrf.mxu2  ;;  %v2227_v8 = vpop.f32.mrf.mxu0 }
 0x308   : > { %v2246_v26 = vadd.f32 %v3227_v10, %v2245_v15  ;;  %v2255_v16 = vpop.f32.mrf.mxu3  ;;  %v2228_v12 = vadd.f32 %v3227_v10, %v2227_v8  ;;  %v2237_v46 = vpop.f32.mrf.mxu1 }
 0x309   : > { %v2256_v5 = vadd.f32 %v3227_v10, %v2255_v16  ;;  %v2238_v45 = vadd.f32 %v3227_v10, %v2237_v46 }
 0x30a   : > { %2270 = vst [vmem:[%s3662_s2 + $0x50] sm:$0xff] %v2246_v26 }
 0x30b   : > { %2274 = vst [vmem:[%s3662_s2 + $0x70] sm:$0xff] %v2256_v5 }
 0x30c   : > { %2263 = vst [vmem:[%s3662_s2 + $0x18] sm:$0xff] %v2228_v12 }
 0x30d   : > { %2267 = vst [vmem:[%s3662_s2 + $0x38] sm:$0xff] %v2238_v45 }
 0x30f   : > { %v2247_v3 = vpop.f32.mrf.mxu2 }
 0x310   : > { %v2248_v20 = vadd.f32 %v3227_v10, %v2247_v3  ;;  %v2257_v32 = vpop.f32.mrf.mxu3 }
 0x311   : > { %v2258_v48 = vadd.f32 %v3227_v10, %v2257_v32 }
 0x312   : > { %2271 = vst [vmem:[%s3662_s2 + $0x58] sm:$0xff] %v2248_v20 }
 0x313   : > { %2275 = vst [vmem:[%s3662_s2 + $0x78] sm:$0xff] %v2258_v48 }
 0x314 PF: > { %s16_s7 = sadd.s32 1, %s3346_s7   ;;  %s4174_s16 = sld [smem:[#allocation5_spill]] }
 0x315   : > { %p13_p11 = scmp.ge.s32.totalorder %s16_s7, 10   ;;  %s4175_s3 = sld [smem:[#allocation6_spill]] }
 0x316   : > { %s4176_s21 = smov %s3310_s22  ;;  %s4177_s22 = smov %s3514_s13 }
 0x317   : > { %s4178_s23 = smov %s3318_s24  ;;  %s4179_s24 = smov %s3511_s15 }
 0x318   : > { %s4180_s25 = smov %s3334_s28  ;;  %s4181_s26 = smov %s3338_s29 }
 0x319   : > { %s4182_s27 = smov %s3342_s30  ;;  %s4183_s28 = smov %s4187_s8 }
 0x31a   : > { %s4184_s29 = smov %s4174_s16  ;;  %15 = sbr.rel (!%p13_p11) target bundleno = 13 (0xd), region = 219 }
 0x31b   : > { %s4185_s30 = smov %s4175_s3 }

</bundles_post_ra>
